<compile_context>
chip_gen: v7x
topology: tpu7x:2x2x1
jax: 0.10.0
libtpu: 0.0.40
codegen_flags: <defaults>
</compile_context>

<pallas_src>
import functools

import jax
import jax.numpy as jnp
import numpy as np
from jax import lax
from jax.experimental import pallas as pl
from jax.experimental.pallas import tpu as pltpu

LANE = 128


def _round_up(v, m):
    return (v + m - 1) // m * m


# ------------------------------ Pallas kernel -------------------------------

def _basic_block_kernel(*refs, stride, H1, W1, cin_p, cout_p, has_ds):
    """Fused BasicBlock forward for one image.

    refs (has_ds=True):  x, w1, b1, w2, b2, wd, bd, out, acc, ypad
    refs (has_ds=False): x, w1, b1, w2, b2,          out, acc, ypad

    x_ref   : (1, Hq, Wq, S*S*cin_p)  space-to-depth, spatially padded input
    w1_ref  : (9, cin_p, cout_p) bf16 (bn1 scale folded in)
    b1_ref  : (1, cout_p) f32
    w2_ref  : (9, cout_p, cout_p) bf16 (bn2 scale folded in)
    b2_ref  : (1, cout_p) f32
    wd_ref  : (cin_p, cout_p) bf16    (downsample bn scale folded in)
    bd_ref  : (1, cout_p) f32
    o_ref   : (1, H1*W1, cout_p) f32  (lane-dense: last dim = 128-multiple)
    acc_ref : (H1*W1, cout_p) f32     VMEM scratch (shared by conv1/conv2)
    ypad_ref: (H1+2, W1+2, cout_p) f32 VMEM scratch (halo-padded conv1 output)
    """
    if has_ds:
        (x_ref, w1_ref, b1_ref, w2_ref, b2_ref, wd_ref, bd_ref,
         o_ref, acc_ref, ypad_ref) = refs
    else:
        (x_ref, w1_ref, b1_ref, w2_ref, b2_ref,
         o_ref, acc_ref, ypad_ref) = refs

    M = H1 * W1

    def x_tap(kh, kw):
        # Input window feeding conv1 tap (kh, kw); stride folded into the
        # space-to-depth channel blocks so this is always a stride-1 slice.
        oh, ow = kh // stride, kw // stride
        cb = ((kh % stride) * stride + (kw % stride)) * cin_p
        s = x_ref[0, oh:oh + H1, ow:ow + W1, cb:cb + cin_p]
        return s.reshape(M, cin_p)

    # ---- conv1 (3x3, stride) as 9 shifted matmuls; bn1 scale folded in w1 --
    acc_ref[...] = jnp.zeros_like(acc_ref)
    for kh in range(3):
        for kw in range(3):
            acc_ref[...] += jnp.dot(
                x_tap(kh, kw).astype(jnp.bfloat16), w1_ref[kh * 3 + kw],
                preferred_element_type=jnp.float32)
    y = jnp.maximum(acc_ref[...] + b1_ref[...], 0.0)   # bn1 bias + ReLU (f32)

    # Stage y in a zero-padded VMEM scratch so conv2 reads its 3x3 halo here.
    ypad_ref[...] = jnp.zeros_like(ypad_ref)
    ypad_ref[1:H1 + 1, 1:W1 + 1, :] = y.reshape(H1, W1, cout_p)

    # ---- conv2 (3x3, stride 1) as 9 shifted matmuls; bn2 scale folded ------
    acc_ref[...] = jnp.zeros_like(acc_ref)
    for kh in range(3):
        for kw in range(3):
            slab = ypad_ref[kh:kh + H1, kw:kw + W1, :].reshape(M, cout_p)
            acc_ref[...] += jnp.dot(
                slab.astype(jnp.bfloat16), w2_ref[kh * 3 + kw],
                preferred_element_type=jnp.float32)
    out = acc_ref[...] + b2_ref[...]                    # bn2 bias (f32)

    # ---- shortcut branch (fused) -------------------------------------------
    if has_ds:
        if stride == 2:
            # 1x1 stride-2 conv reads x[2i, 2j] == space-to-depth phase (1,1).
            xs = x_ref[0, 0:H1, 0:W1, 3 * cin_p:4 * cin_p]
        else:
            # 1x1 stride-1 conv reads the unpadded interior.
            xs = x_ref[0, 1:H1 + 1, 1:W1 + 1, :]
        sc = jnp.dot(xs.reshape(M, cin_p).astype(jnp.bfloat16), wd_ref[...],
                     preferred_element_type=jnp.float32) + bd_ref[...]
    else:
        sc = x_ref[0, 1:H1 + 1, 1:W1 + 1, :].reshape(M, cout_p)

    o_ref[0] = jnp.maximum(out + sc, 0.0)


# ------------------------------- JAX glue -----------------------------------

def _fold_bn(gamma, beta, mean, var, eps=1e-5):
    scale = gamma / jnp.sqrt(var + eps)
    bias = beta - mean * scale
    return scale, bias


def _prep_conv3x3(w_oihw, scale, cin_p, cout_p):
    # (Cout, Cin, 3, 3) * scale[Cout] -> (9, cin_p, cout_p) bf16
    cout, cin = w_oihw.shape[0], w_oihw.shape[1]
    w = jnp.transpose(w_oihw, (2, 3, 1, 0)).reshape(9, cin, cout)
    w = w * scale[None, None, :]
    w = jnp.pad(w, ((0, 0), (0, cin_p - cin), (0, cout_p - cout)))
    return w.astype(jnp.bfloat16)


def _prep_conv1x1(w_oihw, scale, cin_p, cout_p):
    cout, cin = w_oihw.shape[0], w_oihw.shape[1]
    w = jnp.transpose(w_oihw[:, :, 0, 0], (1, 0)) * scale[None, :]
    w = jnp.pad(w, ((0, cin_p - cin), (0, cout_p - cout)))
    return w.astype(jnp.bfloat16)


def _prep_bias(bias, cout_p):
    b = jnp.pad(bias, (0, cout_p - bias.shape[0]))
    return b.reshape(1, cout_p).astype(jnp.float32)


@functools.partial(jax.jit, static_argnames=("c_in", "c_out", "is_downsample"))
def basic_block_forward(x_nchw, params, c_in, c_out, is_downsample):
    """Pallas implementation of BasicBlock.forward (input/output NCHW)."""
    stride = 2 if is_downsample else 1
    has_ds = is_downsample or (c_in != c_out)

    N, _, H, W = x_nchw.shape
    H1 = (H + 2 - 3) // stride + 1
    W1 = (W + 2 - 3) // stride + 1
    M = H1 * W1
    cin_p = _round_up(c_in, LANE)
    cout_p = _round_up(c_out, LANE)

    # NHWC, channel-pad to lane width, spatial zero-pad of 1 (both 3x3 convs
    # use padding=1; the 1x1 shortcut reads the interior / phase (1,1)).
    x = jnp.transpose(x_nchw, (0, 2, 3, 1)).astype(jnp.float32)
    x = jnp.pad(x, ((0, 0), (1, 1), (1, 1), (0, cin_p - c_in)))

    if stride == 2:
        # Space-to-depth: xs[n,r,q,(ph*2+pw)*cin_p+c] = x_pad[n,2r+ph,2q+pw,c]
        # so the stride-2 conv becomes stride-1 window slices in the kernel.
        Hp, Wp = x.shape[1], x.shape[2]
        x = jnp.pad(x, ((0, 0), (0, Hp % 2), (0, Wp % 2), (0, 0)))
        Hq, Wq = x.shape[1] // 2, x.shape[2] // 2
        x = x.reshape(N, Hq, 2, Wq, 2, cin_p).transpose(0, 1, 3, 2, 4, 5)
        x = x.reshape(N, Hq, Wq, 4 * cin_p)
    else:
        Hq, Wq = x.shape[1], x.shape[2]

    # Fold BN scales into the conv weights; only bias adds remain in-kernel.
    s1, b1 = _fold_bn(params["g1"], params["b1"], params["m1"], params["v1"])
    s2, b2 = _fold_bn(params["g2"], params["b2"], params["m2"], params["v2"])
    w1 = _prep_conv3x3(params["w1"], s1, cin_p, cout_p)
    w2 = _prep_conv3x3(params["w2"], s2, cout_p, cout_p)
    b1 = _prep_bias(b1, cout_p)
    b2 = _prep_bias(b2, cout_p)

    args = [x, w1, b1, w2, b2]
    in_specs = [
        pl.BlockSpec((1, Hq, Wq, x.shape[-1]), lambda n: (n, 0, 0, 0)),
        pl.BlockSpec((9, cin_p, cout_p), lambda n: (0, 0, 0)),
        pl.BlockSpec((1, cout_p), lambda n: (0, 0)),
        pl.BlockSpec((9, cout_p, cout_p), lambda n: (0, 0, 0)),
        pl.BlockSpec((1, cout_p), lambda n: (0, 0)),
    ]
    if has_ds:
        sd, bd = _fold_bn(params["gd"], params["bd"], params["md"], params["vd"])
        wd = _prep_conv1x1(params["wd"], sd, cin_p, cout_p)
        bd = _prep_bias(bd, cout_p)
        args += [wd, bd]
        in_specs += [
            pl.BlockSpec((cin_p, cout_p), lambda n: (0, 0)),
            pl.BlockSpec((1, cout_p), lambda n: (0, 0)),
        ]

    kernel = functools.partial(
        _basic_block_kernel, stride=stride, H1=H1, W1=W1,
        cin_p=cin_p, cout_p=cout_p, has_ds=has_ds)

    out = pl.pallas_call(
        kernel,
        out_shape=jax.ShapeDtypeStruct((N, M, cout_p), jnp.float32),
        grid=(N,),
        in_specs=in_specs,
        out_specs=pl.BlockSpec((1, M, cout_p), lambda n: (n, 0, 0)),
        scratch_shapes=[
            pltpu.VMEM((M, cout_p), jnp.float32),
            pltpu.VMEM((H1 + 2, W1 + 2, cout_p), jnp.float32),
        ],
        compiler_params=pltpu.CompilerParams(
            dimension_semantics=("parallel",)),
    )(*args)

    out = out.reshape(N, H1, W1, cout_p)[..., :c_out]
    return jnp.transpose(out, (0, 3, 1, 2))  # back to NCHW


# ---------------------------- pure-JAX reference ----------------------------

def reference_forward(x, params, c_in, c_out, is_downsample):
    stride = 2 if is_downsample else 1
    has_ds = is_downsample or (c_in != c_out)

    def conv(x, w, s, p):
        return lax.conv_general_dilated(
            x, w, (s, s), [(p, p), (p, p)],
            dimension_numbers=("NCHW", "OIHW", "NCHW"),
            precision=lax.Precision.HIGHEST)

    def bn(x, g, b, m, v, eps=1e-5):
        g, b, m, v = (t[None, :, None, None] for t in (g, b, m, v))
        return (x - m) / jnp.sqrt(v + eps) * g + b

    y = conv(x, params["w1"], stride, 1)
    y = jnp.maximum(bn(y, params["g1"], params["b1"], params["m1"], params["v1"]), 0.0)
    y = conv(y, params["w2"], 1, 1)
    y = bn(y, params["g2"], params["b2"], params["m2"], params["v2"])
    if has_ds:
        sc = conv(x, params["wd"], stride, 0)
        sc = bn(sc, params["gd"], params["bd"], params["md"], params["vd"])
    else:
        sc = x
    return jnp.maximum(sc + y, 0.0)


# ------------------------------ param init ----------------------------------

def init_params(key, c_in, c_out, is_downsample):
    has_ds = is_downsample or (c_in != c_out)
    ks = jax.random.split(key, 16)
    p = {
        "w1": 0.1 * jax.random.normal(ks[0], (c_out, c_in, 3, 3), jnp.float32),
        "g1": 1.0 + 0.1 * jax.random.normal(ks[1], (c_out,), jnp.float32),
        "b1": 0.1 * jax.random.normal(ks[2], (c_out,), jnp.float32),
        "m1": 0.05 * jax.random.normal(ks[3], (c_out,), jnp.float32),
        "v1": 0.5 + jax.random.uniform(ks[4], (c_out,), jnp.float32),
        "w2": 0.1 * jax.random.normal(ks[5], (c_out, c_out, 3, 3), jnp.float32),
        "g2": 1.0 + 0.1 * jax.random.normal(ks[6], (c_out,), jnp.float32),
        "b2": 0.1 * jax.random.normal(ks[7], (c_out,), jnp.float32),
        "m2": 0.05 * jax.random.normal(ks[8], (c_out,), jnp.float32),
        "v2": 0.5 + jax.random.uniform(ks[9], (c_out,), jnp.float32),
    }
    if has_ds:
        p.update({
            "wd": 0.1 * jax.random.normal(ks[10], (c_out, c_in, 1, 1), jnp.float32),
            "gd": 1.0 + 0.1 * jax.random.normal(ks[11], (c_out,), jnp.float32),
            "bd": 0.1 * jax.random.normal(ks[12], (c_out,), jnp.float32),
            "md": 0.05 * jax.random.normal(ks[13], (c_out,), jnp.float32),
            "vd": 0.5 + jax.random.uniform(ks[14], (c_out,), jnp.float32),
        })
    return p


# --------------------------------- main --------------------------------------

if __name__ == "__main__":
    key = jax.random.PRNGKey(0)

    # Tolerance: kernel uses bf16 MXU inputs (f32 accumulation) vs. an f32
    # Precision.HIGHEST lax.conv reference.
    RTOL = ATOL = 5e-2

    # Config A: downsample block (stride-2 conv1 + 1x1 stride-2 shortcut).
    kx, kp, key = jax.random.split(key, 3)
    x_a = jax.random.normal(kx, (2, 4, 16, 16), jnp.float32)   # NCHW
    params_a = init_params(kp, 4, 8, True)
    out_a = jax.block_until_ready(
        basic_block_forward(x_a, params_a, c_in=4, c_out=8, is_downsample=True))
    ref_a = reference_forward(x_a, params_a, 4, 8, True)
    np.testing.assert_allclose(np.asarray(out_a), np.asarray(ref_a),
                               rtol=RTOL, atol=ATOL)

    # Config B: identity-shortcut block (c_in == c_out, stride 1).
    kx, kp, key = jax.random.split(key, 3)
    x_b = jax.random.normal(kx, (2, 8, 16, 16), jnp.float32)   # NCHW
    params_b = init_params(kp, 8, 8, False)
    out_b = jax.block_until_ready(
        basic_block_forward(x_b, params_b, c_in=8, c_out=8, is_downsample=False))
    ref_b = reference_forward(x_b, params_b, 8, 8, False)
    np.testing.assert_allclose(np.asarray(out_b), np.asarray(ref_b),
                               rtol=RTOL, atol=ATOL)

    assert out_a.shape == (2, 8, 8, 8) and out_b.shape == (2, 8, 16, 16)
    print("KERNEL_OK")
</pallas_src>

<mosaic_0001>
module attributes {stable_mosaic.version = 11 : i64} {
  func.func @_basic_block_kernel(%arg0: i32, %arg1: memref<1x9x9x512xf32, #tpu.memory_space<vmem>>, %arg2: memref<9x128x128xbf16, #tpu.memory_space<vmem>>, %arg3: memref<1x128xf32, #tpu.memory_space<vmem>>, %arg4: memref<9x128x128xbf16, #tpu.memory_space<vmem>>, %arg5: memref<1x128xf32, #tpu.memory_space<vmem>>, %arg6: memref<128x128xbf16, #tpu.memory_space<vmem>>, %arg7: memref<1x128xf32, #tpu.memory_space<vmem>>, %arg8: memref<1x64x128xf32, #tpu.memory_space<vmem>>, %arg9: memref<64x128xf32, #tpu.memory_space<vmem>>, %arg10: memref<10x10x128xf32, #tpu.memory_space<vmem>>) attributes {dimension_semantics = [#tpu.dimension_semantics<parallel>], iteration_bounds = array<i64: 2>, scalar_prefetch = 0 : i64, scratch_operands = 2 : i64, tpu.core_type = #tpu.core_type<tc>, window_params = [{transform_indices = @transform_0, window_bounds = array<i64: 1, 9, 9, 512>}, {pipeline_mode = #tpu.pipeline_mode<synchronous>, transform_indices = @transform_1, window_bounds = array<i64: 9, 128, 128>}, {pipeline_mode = #tpu.pipeline_mode<synchronous>, transform_indices = @transform_2, window_bounds = array<i64: 1, 128>}, {pipeline_mode = #tpu.pipeline_mode<synchronous>, transform_indices = @transform_3, window_bounds = array<i64: 9, 128, 128>}, {pipeline_mode = #tpu.pipeline_mode<synchronous>, transform_indices = @transform_4, window_bounds = array<i64: 1, 128>}, {pipeline_mode = #tpu.pipeline_mode<synchronous>, transform_indices = @transform_5, window_bounds = array<i64: 128, 128>}, {pipeline_mode = #tpu.pipeline_mode<synchronous>, transform_indices = @transform_6, window_bounds = array<i64: 1, 128>}, {transform_indices = @transform_7, window_bounds = array<i64: 1, 64, 128>}]} {
    %cst = arith.constant 0.000000e+00 : f32
    %0 = vector.broadcast %cst : f32 to vector<64x128xf32>
    %c0 = arith.constant 0 : index
    %c0_0 = arith.constant 0 : index
    %1 = vector.load %arg9[%c0, %c0_0] : memref<64x128xf32, #tpu.memory_space<vmem>>, vector<64x128xf32>
    tpu.vector_store %arg9[%c0, %c0_0], %0 {strides = array<i32>} : memref<64x128xf32, #tpu.memory_space<vmem>>, vector<64x128xf32>,
    %c0_1 = arith.constant 0 : index
    %c0_2 = arith.constant 0 : index
    %2 = vector.load %arg9[%c0_1, %c0_2] : memref<64x128xf32, #tpu.memory_space<vmem>>, vector<64x128xf32>
    %c0_3 = arith.constant 0 : index
    %c0_4 = arith.constant 0 : index
    %c0_5 = arith.constant 0 : index
    %c0_6 = arith.constant 0 : index
    %3 = vector.load %arg1[%c0_3, %c0_4, %c0_5, %c0_6] : memref<1x9x9x512xf32, #tpu.memory_space<vmem>>, vector<1x8x8x128xf32>
    %4 = vector.shape_cast %3 : vector<1x8x8x128xf32> to vector<8x8x128xf32>
    %5 = vector.shape_cast %4 : vector<8x8x128xf32> to vector<64x128xf32>
    %6 = arith.truncf %5 : vector<64x128xf32> to vector<64x128xbf16>
    %c0_7 = arith.constant 0 : index
    %c0_8 = arith.constant 0 : index
    %c0_9 = arith.constant 0 : index
    %7 = vector.load %arg2[%c0_7, %c0_8, %c0_9] : memref<9x128x128xbf16, #tpu.memory_space<vmem>>, vector<1x128x128xbf16>
    %8 = vector.shape_cast %7 : vector<1x128x128xbf16> to vector<128x128xbf16>
    %cst_10 = arith.constant dense<0.000000e+00> : vector<64x128xf32>
    %9 = tpu.matmul %6, %8, %cst_10 {dimension_numbers = #tpu.dot_dimension_numbers<[1], [0], [0], [1], [0, 0, 1, 1], [], []>} : vector<64x128xbf16>, vector<128x128xbf16>, vector<64x128xf32> -> vector<64x128xf32>
    %10 = arith.addf %2, %9 : vector<64x128xf32>
    %c0_11 = arith.constant 0 : index
    %c0_12 = arith.constant 0 : index
    %11 = vector.load %arg9[%c0_11, %c0_12] : memref<64x128xf32, #tpu.memory_space<vmem>>, vector<64x128xf32>
    tpu.vector_store %arg9[%c0_11, %c0_12], %10 {strides = array<i32>} : memref<64x128xf32, #tpu.memory_space<vmem>>, vector<64x128xf32>,
    %c0_13 = arith.constant 0 : index
    %c0_14 = arith.constant 0 : index
    %12 = vector.load %arg9[%c0_13, %c0_14] : memref<64x128xf32, #tpu.memory_space<vmem>>, vector<64x128xf32>
    %c0_15 = arith.constant 0 : index
    %c0_16 = arith.constant 0 : index
    %c0_17 = arith.constant 0 : index
    %c128 = arith.constant 128 : index
    %13 = vector.load %arg1[%c0_15, %c0_16, %c0_17, %c128] : memref<1x9x9x512xf32, #tpu.memory_space<vmem>>, vector<1x8x8x128xf32>
    %14 = vector.shape_cast %13 : vector<1x8x8x128xf32> to vector<8x8x128xf32>
    %15 = vector.shape_cast %14 : vector<8x8x128xf32> to vector<64x128xf32>
    %16 = arith.truncf %15 : vector<64x128xf32> to vector<64x128xbf16>
    %c1 = arith.constant 1 : index
    %c0_18 = arith.constant 0 : index
    %c0_19 = arith.constant 0 : index
    %17 = vector.load %arg2[%c1, %c0_18, %c0_19] : memref<9x128x128xbf16, #tpu.memory_space<vmem>>, vector<1x128x128xbf16>
    %18 = vector.shape_cast %17 : vector<1x128x128xbf16> to vector<128x128xbf16>
    %cst_20 = arith.constant dense<0.000000e+00> : vector<64x128xf32>
    %19 = tpu.matmul %16, %18, %cst_20 {dimension_numbers = #tpu.dot_dimension_numbers<[1], [0], [0], [1], [0, 0, 1, 1], [], []>} : vector<64x128xbf16>, vector<128x128xbf16>, vector<64x128xf32> -> vector<64x128xf32>
    %20 = arith.addf %12, %19 : vector<64x128xf32>
    %c0_21 = arith.constant 0 : index
    %c0_22 = arith.constant 0 : index
    %21 = vector.load %arg9[%c0_21, %c0_22] : memref<64x128xf32, #tpu.memory_space<vmem>>, vector<64x128xf32>
    tpu.vector_store %arg9[%c0_21, %c0_22], %20 {strides = array<i32>} : memref<64x128xf32, #tpu.memory_space<vmem>>, vector<64x128xf32>,
    %c0_23 = arith.constant 0 : index
    %c0_24 = arith.constant 0 : index
    %22 = vector.load %arg9[%c0_23, %c0_24] : memref<64x128xf32, #tpu.memory_space<vmem>>, vector<64x128xf32>
    %c0_25 = arith.constant 0 : index
    %c0_26 = arith.constant 0 : index
    %c1_27 = arith.constant 1 : index
    %c0_28 = arith.constant 0 : index
    %23 = vector.load %arg1[%c0_25, %c0_26, %c1_27, %c0_28] : memref<1x9x9x512xf32, #tpu.memory_space<vmem>>, vector<1x8x8x128xf32>
    %24 = vector.shape_cast %23 : vector<1x8x8x128xf32> to vector<8x8x128xf32>
    %25 = vector.shape_cast %24 : vector<8x8x128xf32> to vector<64x128xf32>
    %26 = arith.truncf %25 : vector<64x128xf32> to vector<64x128xbf16>
    %c2 = arith.constant 2 : index
    %c0_29 = arith.constant 0 : index
    %c0_30 = arith.constant 0 : index
    %27 = vector.load %arg2[%c2, %c0_29, %c0_30] : memref<9x128x128xbf16, #tpu.memory_space<vmem>>, vector<1x128x128xbf16>
    %28 = vector.shape_cast %27 : vector<1x128x128xbf16> to vector<128x128xbf16>
    %cst_31 = arith.constant dense<0.000000e+00> : vector<64x128xf32>
    %29 = tpu.matmul %26, %28, %cst_31 {dimension_numbers = #tpu.dot_dimension_numbers<[1], [0], [0], [1], [0, 0, 1, 1], [], []>} : vector<64x128xbf16>, vector<128x128xbf16>, vector<64x128xf32> -> vector<64x128xf32>
    %30 = arith.addf %22, %29 : vector<64x128xf32>
    %c0_32 = arith.constant 0 : index
    %c0_33 = arith.constant 0 : index
    %31 = vector.load %arg9[%c0_32, %c0_33] : memref<64x128xf32, #tpu.memory_space<vmem>>, vector<64x128xf32>
    tpu.vector_store %arg9[%c0_32, %c0_33], %30 {strides = array<i32>} : memref<64x128xf32, #tpu.memory_space<vmem>>, vector<64x128xf32>,
    %c0_34 = arith.constant 0 : index
    %c0_35 = arith.constant 0 : index
    %32 = vector.load %arg9[%c0_34, %c0_35] : memref<64x128xf32, #tpu.memory_space<vmem>>, vector<64x128xf32>
    %c0_36 = arith.constant 0 : index
    %c0_37 = arith.constant 0 : index
    %c0_38 = arith.constant 0 : index
    %c256 = arith.constant 256 : index
    %33 = vector.load %arg1[%c0_36, %c0_37, %c0_38, %c256] : memref<1x9x9x512xf32, #tpu.memory_space<vmem>>, vector<1x8x8x128xf32>
    %34 = vector.shape_cast %33 : vector<1x8x8x128xf32> to vector<8x8x128xf32>
    %35 = vector.shape_cast %34 : vector<8x8x128xf32> to vector<64x128xf32>
    %36 = arith.truncf %35 : vector<64x128xf32> to vector<64x128xbf16>
    %c3 = arith.constant 3 : index
    %c0_39 = arith.constant 0 : index
    %c0_40 = arith.constant 0 : index
    %37 = vector.load %arg2[%c3, %c0_39, %c0_40] : memref<9x128x128xbf16, #tpu.memory_space<vmem>>, vector<1x128x128xbf16>
    %38 = vector.shape_cast %37 : vector<1x128x128xbf16> to vector<128x128xbf16>
    %cst_41 = arith.constant dense<0.000000e+00> : vector<64x128xf32>
    %39 = tpu.matmul %36, %38, %cst_41 {dimension_numbers = #tpu.dot_dimension_numbers<[1], [0], [0], [1], [0, 0, 1, 1], [], []>} : vector<64x128xbf16>, vector<128x128xbf16>, vector<64x128xf32> -> vector<64x128xf32>
    %40 = arith.addf %32, %39 : vector<64x128xf32>
    %c0_42 = arith.constant 0 : index
    %c0_43 = arith.constant 0 : index
    %41 = vector.load %arg9[%c0_42, %c0_43] : memref<64x128xf32, #tpu.memory_space<vmem>>, vector<64x128xf32>
    tpu.vector_store %arg9[%c0_42, %c0_43], %40 {strides = array<i32>} : memref<64x128xf32, #tpu.memory_space<vmem>>, vector<64x128xf32>,
    %c0_44 = arith.constant 0 : index
    %c0_45 = arith.constant 0 : index
    %42 = vector.load %arg9[%c0_44, %c0_45] : memref<64x128xf32, #tpu.memory_space<vmem>>, vector<64x128xf32>
    %c0_46 = arith.constant 0 : index
    %c0_47 = arith.constant 0 : index
    %c0_48 = arith.constant 0 : index
    %c384 = arith.constant 384 : index
    %43 = vector.load %arg1[%c0_46, %c0_47, %c0_48, %c384] : memref<1x9x9x512xf32, #tpu.memory_space<vmem>>, vector<1x8x8x128xf32>
    %44 = vector.shape_cast %43 : vector<1x8x8x128xf32> to vector<8x8x128xf32>
    %45 = vector.shape_cast %44 : vector<8x8x128xf32> to vector<64x128xf32>
    %46 = arith.truncf %45 : vector<64x128xf32> to vector<64x128xbf16>
    %c4 = arith.constant 4 : index
    %c0_49 = arith.constant 0 : index
    %c0_50 = arith.constant 0 : index
    %47 = vector.load %arg2[%c4, %c0_49, %c0_50] : memref<9x128x128xbf16, #tpu.memory_space<vmem>>, vector<1x128x128xbf16>
    %48 = vector.shape_cast %47 : vector<1x128x128xbf16> to vector<128x128xbf16>
    %cst_51 = arith.constant dense<0.000000e+00> : vector<64x128xf32>
    %49 = tpu.matmul %46, %48, %cst_51 {dimension_numbers = #tpu.dot_dimension_numbers<[1], [0], [0], [1], [0, 0, 1, 1], [], []>} : vector<64x128xbf16>, vector<128x128xbf16>, vector<64x128xf32> -> vector<64x128xf32>
    %50 = arith.addf %42, %49 : vector<64x128xf32>
    %c0_52 = arith.constant 0 : index
    %c0_53 = arith.constant 0 : index
    %51 = vector.load %arg9[%c0_52, %c0_53] : memref<64x128xf32, #tpu.memory_space<vmem>>, vector<64x128xf32>
    tpu.vector_store %arg9[%c0_52, %c0_53], %50 {strides = array<i32>} : memref<64x128xf32, #tpu.memory_space<vmem>>, vector<64x128xf32>,
    %c0_54 = arith.constant 0 : index
    %c0_55 = arith.constant 0 : index
    %52 = vector.load %arg9[%c0_54, %c0_55] : memref<64x128xf32, #tpu.memory_space<vmem>>, vector<64x128xf32>
    %c0_56 = arith.constant 0 : index
    %c0_57 = arith.constant 0 : index
    %c1_58 = arith.constant 1 : index
    %c256_59 = arith.constant 256 : index
    %53 = vector.load %arg1[%c0_56, %c0_57, %c1_58, %c256_59] : memref<1x9x9x512xf32, #tpu.memory_space<vmem>>, vector<1x8x8x128xf32>
    %54 = vector.shape_cast %53 : vector<1x8x8x128xf32> to vector<8x8x128xf32>
    %55 = vector.shape_cast %54 : vector<8x8x128xf32> to vector<64x128xf32>
    %56 = arith.truncf %55 : vector<64x128xf32> to vector<64x128xbf16>
    %c5 = arith.constant 5 : index
    %c0_60 = arith.constant 0 : index
    %c0_61 = arith.constant 0 : index
    %57 = vector.load %arg2[%c5, %c0_60, %c0_61] : memref<9x128x128xbf16, #tpu.memory_space<vmem>>, vector<1x128x128xbf16>
    %58 = vector.shape_cast %57 : vector<1x128x128xbf16> to vector<128x128xbf16>
    %cst_62 = arith.constant dense<0.000000e+00> : vector<64x128xf32>
    %59 = tpu.matmul %56, %58, %cst_62 {dimension_numbers = #tpu.dot_dimension_numbers<[1], [0], [0], [1], [0, 0, 1, 1], [], []>} : vector<64x128xbf16>, vector<128x128xbf16>, vector<64x128xf32> -> vector<64x128xf32>
    %60 = arith.addf %52, %59 : vector<64x128xf32>
    %c0_63 = arith.constant 0 : index
    %c0_64 = arith.constant 0 : index
    %61 = vector.load %arg9[%c0_63, %c0_64] : memref<64x128xf32, #tpu.memory_space<vmem>>, vector<64x128xf32>
    tpu.vector_store %arg9[%c0_63, %c0_64], %60 {strides = array<i32>} : memref<64x128xf32, #tpu.memory_space<vmem>>, vector<64x128xf32>,
    %c0_65 = arith.constant 0 : index
    %c0_66 = arith.constant 0 : index
    %62 = vector.load %arg9[%c0_65, %c0_66] : memref<64x128xf32, #tpu.memory_space<vmem>>, vector<64x128xf32>
    %c0_67 = arith.constant 0 : index
    %c1_68 = arith.constant 1 : index
    %c0_69 = arith.constant 0 : index
    %c0_70 = arith.constant 0 : index
    %63 = vector.load %arg1[%c0_67, %c1_68, %c0_69, %c0_70] : memref<1x9x9x512xf32, #tpu.memory_space<vmem>>, vector<1x8x8x128xf32>
    %64 = vector.shape_cast %63 : vector<1x8x8x128xf32> to vector<8x8x128xf32>
    %65 = vector.shape_cast %64 : vector<8x8x128xf32> to vector<64x128xf32>
    %66 = arith.truncf %65 : vector<64x128xf32> to vector<64x128xbf16>
    %c6 = arith.constant 6 : index
    %c0_71 = arith.constant 0 : index
    %c0_72 = arith.constant 0 : index
    %67 = vector.load %arg2[%c6, %c0_71, %c0_72] : memref<9x128x128xbf16, #tpu.memory_space<vmem>>, vector<1x128x128xbf16>
    %68 = vector.shape_cast %67 : vector<1x128x128xbf16> to vector<128x128xbf16>
    %cst_73 = arith.constant dense<0.000000e+00> : vector<64x128xf32>
    %69 = tpu.matmul %66, %68, %cst_73 {dimension_numbers = #tpu.dot_dimension_numbers<[1], [0], [0], [1], [0, 0, 1, 1], [], []>} : vector<64x128xbf16>, vector<128x128xbf16>, vector<64x128xf32> -> vector<64x128xf32>
    %70 = arith.addf %62, %69 : vector<64x128xf32>
    %c0_74 = arith.constant 0 : index
    %c0_75 = arith.constant 0 : index
    %71 = vector.load %arg9[%c0_74, %c0_75] : memref<64x128xf32, #tpu.memory_space<vmem>>, vector<64x128xf32>
    tpu.vector_store %arg9[%c0_74, %c0_75], %70 {strides = array<i32>} : memref<64x128xf32, #tpu.memory_space<vmem>>, vector<64x128xf32>,
    %c0_76 = arith.constant 0 : index
    %c0_77 = arith.constant 0 : index
    %72 = vector.load %arg9[%c0_76, %c0_77] : memref<64x128xf32, #tpu.memory_space<vmem>>, vector<64x128xf32>
    %c0_78 = arith.constant 0 : index
    %c1_79 = arith.constant 1 : index
    %c0_80 = arith.constant 0 : index
    %c128_81 = arith.constant 128 : index
    %73 = vector.load %arg1[%c0_78, %c1_79, %c0_80, %c128_81] : memref<1x9x9x512xf32, #tpu.memory_space<vmem>>, vector<1x8x8x128xf32>
    %74 = vector.shape_cast %73 : vector<1x8x8x128xf32> to vector<8x8x128xf32>
    %75 = vector.shape_cast %74 : vector<8x8x128xf32> to vector<64x128xf32>
    %76 = arith.truncf %75 : vector<64x128xf32> to vector<64x128xbf16>
    %c7 = arith.constant 7 : index
    %c0_82 = arith.constant 0 : index
    %c0_83 = arith.constant 0 : index
    %77 = vector.load %arg2[%c7, %c0_82, %c0_83] : memref<9x128x128xbf16, #tpu.memory_space<vmem>>, vector<1x128x128xbf16>
    %78 = vector.shape_cast %77 : vector<1x128x128xbf16> to vector<128x128xbf16>
    %cst_84 = arith.constant dense<0.000000e+00> : vector<64x128xf32>
    %79 = tpu.matmul %76, %78, %cst_84 {dimension_numbers = #tpu.dot_dimension_numbers<[1], [0], [0], [1], [0, 0, 1, 1], [], []>} : vector<64x128xbf16>, vector<128x128xbf16>, vector<64x128xf32> -> vector<64x128xf32>
    %80 = arith.addf %72, %79 : vector<64x128xf32>
    %c0_85 = arith.constant 0 : index
    %c0_86 = arith.constant 0 : index
    %81 = vector.load %arg9[%c0_85, %c0_86] : memref<64x128xf32, #tpu.memory_space<vmem>>, vector<64x128xf32>
    tpu.vector_store %arg9[%c0_85, %c0_86], %80 {strides = array<i32>} : memref<64x128xf32, #tpu.memory_space<vmem>>, vector<64x128xf32>,
    %c0_87 = arith.constant 0 : index
    %c0_88 = arith.constant 0 : index
    %82 = vector.load %arg9[%c0_87, %c0_88] : memref<64x128xf32, #tpu.memory_space<vmem>>, vector<64x128xf32>
    %c0_89 = arith.constant 0 : index
    %c1_90 = arith.constant 1 : index
    %c1_91 = arith.constant 1 : index
    %c0_92 = arith.constant 0 : index
    %83 = vector.load %arg1[%c0_89, %c1_90, %c1_91, %c0_92] : memref<1x9x9x512xf32, #tpu.memory_space<vmem>>, vector<1x8x8x128xf32>
    %84 = vector.shape_cast %83 : vector<1x8x8x128xf32> to vector<8x8x128xf32>
    %85 = vector.shape_cast %84 : vector<8x8x128xf32> to vector<64x128xf32>
    %86 = arith.truncf %85 : vector<64x128xf32> to vector<64x128xbf16>
    %c8 = arith.constant 8 : index
    %c0_93 = arith.constant 0 : index
    %c0_94 = arith.constant 0 : index
    %87 = vector.load %arg2[%c8, %c0_93, %c0_94] : memref<9x128x128xbf16, #tpu.memory_space<vmem>>, vector<1x128x128xbf16>
    %88 = vector.shape_cast %87 : vector<1x128x128xbf16> to vector<128x128xbf16>
    %cst_95 = arith.constant dense<0.000000e+00> : vector<64x128xf32>
    %89 = tpu.matmul %86, %88, %cst_95 {dimension_numbers = #tpu.dot_dimension_numbers<[1], [0], [0], [1], [0, 0, 1, 1], [], []>} : vector<64x128xbf16>, vector<128x128xbf16>, vector<64x128xf32> -> vector<64x128xf32>
    %90 = arith.addf %82, %89 : vector<64x128xf32>
    %c0_96 = arith.constant 0 : index
    %c0_97 = arith.constant 0 : index
    %91 = vector.load %arg9[%c0_96, %c0_97] : memref<64x128xf32, #tpu.memory_space<vmem>>, vector<64x128xf32>
    tpu.vector_store %arg9[%c0_96, %c0_97], %90 {strides = array<i32>} : memref<64x128xf32, #tpu.memory_space<vmem>>, vector<64x128xf32>,
    %c0_98 = arith.constant 0 : index
    %c0_99 = arith.constant 0 : index
    %92 = vector.load %arg9[%c0_98, %c0_99] : memref<64x128xf32, #tpu.memory_space<vmem>>, vector<64x128xf32>
    %c0_100 = arith.constant 0 : index
    %c0_101 = arith.constant 0 : index
    %93 = vector.load %arg3[%c0_100, %c0_101] : memref<1x128xf32, #tpu.memory_space<vmem>>, vector<1x128xf32>
    %94 = vector.broadcast %93 : vector<1x128xf32> to vector<64x128xf32>
    %95 = arith.addf %92, %94 : vector<64x128xf32>
    %cst_102 = arith.constant 0.000000e+00 : f32
    %96 = vector.broadcast %cst_102 : f32 to vector<64x128xf32>
    %97 = arith.maximumf %95, %96 : vector<64x128xf32>
    %cst_103 = arith.constant 0.000000e+00 : f32
    %98 = vector.broadcast %cst_103 : f32 to vector<10x10x128xf32>
    %c0_104 = arith.constant 0 : index
    %c0_105 = arith.constant 0 : index
    %c0_106 = arith.constant 0 : index
    %99 = vector.load %arg10[%c0_104, %c0_105, %c0_106] : memref<10x10x128xf32, #tpu.memory_space<vmem>>, vector<10x10x128xf32>
    tpu.vector_store %arg10[%c0_104, %c0_105, %c0_106], %98 {strides = array<i32>} : memref<10x10x128xf32, #tpu.memory_space<vmem>>, vector<10x10x128xf32>,
    %100 = vector.shape_cast %97 : vector<64x128xf32> to vector<8x8x128xf32>
    %c1_107 = arith.constant 1 : index
    %c1_108 = arith.constant 1 : index
    %c0_109 = arith.constant 0 : index
    %101 = vector.load %arg10[%c1_107, %c1_108, %c0_109] : memref<10x10x128xf32, #tpu.memory_space<vmem>>, vector<8x8x128xf32>
    tpu.vector_store %arg10[%c1_107, %c1_108, %c0_109], %100 {strides = array<i32>} : memref<10x10x128xf32, #tpu.memory_space<vmem>>, vector<8x8x128xf32>,
    %cst_110 = arith.constant 0.000000e+00 : f32
    %102 = vector.broadcast %cst_110 : f32 to vector<64x128xf32>
    %c0_111 = arith.constant 0 : index
    %c0_112 = arith.constant 0 : index
    %103 = vector.load %arg9[%c0_111, %c0_112] : memref<64x128xf32, #tpu.memory_space<vmem>>, vector<64x128xf32>
    tpu.vector_store %arg9[%c0_111, %c0_112], %102 {strides = array<i32>} : memref<64x128xf32, #tpu.memory_space<vmem>>, vector<64x128xf32>,
    %c0_113 = arith.constant 0 : index
    %c0_114 = arith.constant 0 : index
    %c0_115 = arith.constant 0 : index
    %104 = vector.load %arg10[%c0_113, %c0_114, %c0_115] : memref<10x10x128xf32, #tpu.memory_space<vmem>>, vector<8x8x128xf32>
    %105 = vector.shape_cast %104 : vector<8x8x128xf32> to vector<64x128xf32>
    %c0_116 = arith.constant 0 : index
    %c0_117 = arith.constant 0 : index
    %106 = vector.load %arg9[%c0_116, %c0_117] : memref<64x128xf32, #tpu.memory_space<vmem>>, vector<64x128xf32>
    %107 = arith.truncf %105 : vector<64x128xf32> to vector<64x128xbf16>
    %c0_118 = arith.constant 0 : index
    %c0_119 = arith.constant 0 : index
    %c0_120 = arith.constant 0 : index
    %108 = vector.load %arg4[%c0_118, %c0_119, %c0_120] : memref<9x128x128xbf16, #tpu.memory_space<vmem>>, vector<1x128x128xbf16>
    %109 = vector.shape_cast %108 : vector<1x128x128xbf16> to vector<128x128xbf16>
    %cst_121 = arith.constant dense<0.000000e+00> : vector<64x128xf32>
    %110 = tpu.matmul %107, %109, %cst_121 {dimension_numbers = #tpu.dot_dimension_numbers<[1], [0], [0], [1], [0, 0, 1, 1], [], []>} : vector<64x128xbf16>, vector<128x128xbf16>, vector<64x128xf32> -> vector<64x128xf32>
    %111 = arith.addf %106, %110 : vector<64x128xf32>
    %c0_122 = arith.constant 0 : index
    %c0_123 = arith.constant 0 : index
    %112 = vector.load %arg9[%c0_122, %c0_123] : memref<64x128xf32, #tpu.memory_space<vmem>>, vector<64x128xf32>
    tpu.vector_store %arg9[%c0_122, %c0_123], %111 {strides = array<i32>} : memref<64x128xf32, #tpu.memory_space<vmem>>, vector<64x128xf32>,
    %c0_124 = arith.constant 0 : index
    %c1_125 = arith.constant 1 : index
    %c0_126 = arith.constant 0 : index
    %113 = vector.load %arg10[%c0_124, %c1_125, %c0_126] : memref<10x10x128xf32, #tpu.memory_space<vmem>>, vector<8x8x128xf32>
    %114 = vector.shape_cast %113 : vector<8x8x128xf32> to vector<64x128xf32>
    %c0_127 = arith.constant 0 : index
    %c0_128 = arith.constant 0 : index
    %115 = vector.load %arg9[%c0_127, %c0_128] : memref<64x128xf32, #tpu.memory_space<vmem>>, vector<64x128xf32>
    %116 = arith.truncf %114 : vector<64x128xf32> to vector<64x128xbf16>
    %c1_129 = arith.constant 1 : index
    %c0_130 = arith.constant 0 : index
    %c0_131 = arith.constant 0 : index
    %117 = vector.load %arg4[%c1_129, %c0_130, %c0_131] : memref<9x128x128xbf16, #tpu.memory_space<vmem>>, vector<1x128x128xbf16>
    %118 = vector.shape_cast %117 : vector<1x128x128xbf16> to vector<128x128xbf16>
    %cst_132 = arith.constant dense<0.000000e+00> : vector<64x128xf32>
    %119 = tpu.matmul %116, %118, %cst_132 {dimension_numbers = #tpu.dot_dimension_numbers<[1], [0], [0], [1], [0, 0, 1, 1], [], []>} : vector<64x128xbf16>, vector<128x128xbf16>, vector<64x128xf32> -> vector<64x128xf32>
    %120 = arith.addf %115, %119 : vector<64x128xf32>
    %c0_133 = arith.constant 0 : index
    %c0_134 = arith.constant 0 : index
    %121 = vector.load %arg9[%c0_133, %c0_134] : memref<64x128xf32, #tpu.memory_space<vmem>>, vector<64x128xf32>
    tpu.vector_store %arg9[%c0_133, %c0_134], %120 {strides = array<i32>} : memref<64x128xf32, #tpu.memory_space<vmem>>, vector<64x128xf32>,
    %c0_135 = arith.constant 0 : index
    %c2_136 = arith.constant 2 : index
    %c0_137 = arith.constant 0 : index
    %122 = vector.load %arg10[%c0_135, %c2_136, %c0_137] : memref<10x10x128xf32, #tpu.memory_space<vmem>>, vector<8x8x128xf32>
    %123 = vector.shape_cast %122 : vector<8x8x128xf32> to vector<64x128xf32>
    %c0_138 = arith.constant 0 : index
    %c0_139 = arith.constant 0 : index
    %124 = vector.load %arg9[%c0_138, %c0_139] : memref<64x128xf32, #tpu.memory_space<vmem>>, vector<64x128xf32>
    %125 = arith.truncf %123 : vector<64x128xf32> to vector<64x128xbf16>
    %c2_140 = arith.constant 2 : index
    %c0_141 = arith.constant 0 : index
    %c0_142 = arith.constant 0 : index
    %126 = vector.load %arg4[%c2_140, %c0_141, %c0_142] : memref<9x128x128xbf16, #tpu.memory_space<vmem>>, vector<1x128x128xbf16>
    %127 = vector.shape_cast %126 : vector<1x128x128xbf16> to vector<128x128xbf16>
    %cst_143 = arith.constant dense<0.000000e+00> : vector<64x128xf32>
    %128 = tpu.matmul %125, %127, %cst_143 {dimension_numbers = #tpu.dot_dimension_numbers<[1], [0], [0], [1], [0, 0, 1, 1], [], []>} : vector<64x128xbf16>, vector<128x128xbf16>, vector<64x128xf32> -> vector<64x128xf32>
    %129 = arith.addf %124, %128 : vector<64x128xf32>
    %c0_144 = arith.constant 0 : index
    %c0_145 = arith.constant 0 : index
    %130 = vector.load %arg9[%c0_144, %c0_145] : memref<64x128xf32, #tpu.memory_space<vmem>>, vector<64x128xf32>
    tpu.vector_store %arg9[%c0_144, %c0_145], %129 {strides = array<i32>} : memref<64x128xf32, #tpu.memory_space<vmem>>, vector<64x128xf32>,
    %c1_146 = arith.constant 1 : index
    %c0_147 = arith.constant 0 : index
    %c0_148 = arith.constant 0 : index
    %131 = vector.load %arg10[%c1_146, %c0_147, %c0_148] : memref<10x10x128xf32, #tpu.memory_space<vmem>>, vector<8x8x128xf32>
    %132 = vector.shape_cast %131 : vector<8x8x128xf32> to vector<64x128xf32>
    %c0_149 = arith.constant 0 : index
    %c0_150 = arith.constant 0 : index
    %133 = vector.load %arg9[%c0_149, %c0_150] : memref<64x128xf32, #tpu.memory_space<vmem>>, vector<64x128xf32>
    %134 = arith.truncf %132 : vector<64x128xf32> to vector<64x128xbf16>
    %c3_151 = arith.constant 3 : index
    %c0_152 = arith.constant 0 : index
    %c0_153 = arith.constant 0 : index
    %135 = vector.load %arg4[%c3_151, %c0_152, %c0_153] : memref<9x128x128xbf16, #tpu.memory_space<vmem>>, vector<1x128x128xbf16>
    %136 = vector.shape_cast %135 : vector<1x128x128xbf16> to vector<128x128xbf16>
    %cst_154 = arith.constant dense<0.000000e+00> : vector<64x128xf32>
    %137 = tpu.matmul %134, %136, %cst_154 {dimension_numbers = #tpu.dot_dimension_numbers<[1], [0], [0], [1], [0, 0, 1, 1], [], []>} : vector<64x128xbf16>, vector<128x128xbf16>, vector<64x128xf32> -> vector<64x128xf32>
    %138 = arith.addf %133, %137 : vector<64x128xf32>
    %c0_155 = arith.constant 0 : index
    %c0_156 = arith.constant 0 : index
    %139 = vector.load %arg9[%c0_155, %c0_156] : memref<64x128xf32, #tpu.memory_space<vmem>>, vector<64x128xf32>
    tpu.vector_store %arg9[%c0_155, %c0_156], %138 {strides = array<i32>} : memref<64x128xf32, #tpu.memory_space<vmem>>, vector<64x128xf32>,
    %c1_157 = arith.constant 1 : index
    %c1_158 = arith.constant 1 : index
    %c0_159 = arith.constant 0 : index
    %140 = vector.load %arg10[%c1_157, %c1_158, %c0_159] : memref<10x10x128xf32, #tpu.memory_space<vmem>>, vector<8x8x128xf32>
    %141 = vector.shape_cast %140 : vector<8x8x128xf32> to vector<64x128xf32>
    %c0_160 = arith.constant 0 : index
    %c0_161 = arith.constant 0 : index
    %142 = vector.load %arg9[%c0_160, %c0_161] : memref<64x128xf32, #tpu.memory_space<vmem>>, vector<64x128xf32>
    %143 = arith.truncf %141 : vector<64x128xf32> to vector<64x128xbf16>
    %c4_162 = arith.constant 4 : index
    %c0_163 = arith.constant 0 : index
    %c0_164 = arith.constant 0 : index
    %144 = vector.load %arg4[%c4_162, %c0_163, %c0_164] : memref<9x128x128xbf16, #tpu.memory_space<vmem>>, vector<1x128x128xbf16>
    %145 = vector.shape_cast %144 : vector<1x128x128xbf16> to vector<128x128xbf16>
    %cst_165 = arith.constant dense<0.000000e+00> : vector<64x128xf32>
    %146 = tpu.matmul %143, %145, %cst_165 {dimension_numbers = #tpu.dot_dimension_numbers<[1], [0], [0], [1], [0, 0, 1, 1], [], []>} : vector<64x128xbf16>, vector<128x128xbf16>, vector<64x128xf32> -> vector<64x128xf32>
    %147 = arith.addf %142, %146 : vector<64x128xf32>
    %c0_166 = arith.constant 0 : index
    %c0_167 = arith.constant 0 : index
    %148 = vector.load %arg9[%c0_166, %c0_167] : memref<64x128xf32, #tpu.memory_space<vmem>>, vector<64x128xf32>
    tpu.vector_store %arg9[%c0_166, %c0_167], %147 {strides = array<i32>} : memref<64x128xf32, #tpu.memory_space<vmem>>, vector<64x128xf32>,
    %c1_168 = arith.constant 1 : index
    %c2_169 = arith.constant 2 : index
    %c0_170 = arith.constant 0 : index
    %149 = vector.load %arg10[%c1_168, %c2_169, %c0_170] : memref<10x10x128xf32, #tpu.memory_space<vmem>>, vector<8x8x128xf32>
    %150 = vector.shape_cast %149 : vector<8x8x128xf32> to vector<64x128xf32>
    %c0_171 = arith.constant 0 : index
    %c0_172 = arith.constant 0 : index
    %151 = vector.load %arg9[%c0_171, %c0_172] : memref<64x128xf32, #tpu.memory_space<vmem>>, vector<64x128xf32>
    %152 = arith.truncf %150 : vector<64x128xf32> to vector<64x128xbf16>
    %c5_173 = arith.constant 5 : index
    %c0_174 = arith.constant 0 : index
    %c0_175 = arith.constant 0 : index
    %153 = vector.load %arg4[%c5_173, %c0_174, %c0_175] : memref<9x128x128xbf16, #tpu.memory_space<vmem>>, vector<1x128x128xbf16>
    %154 = vector.shape_cast %153 : vector<1x128x128xbf16> to vector<128x128xbf16>
    %cst_176 = arith.constant dense<0.000000e+00> : vector<64x128xf32>
    %155 = tpu.matmul %152, %154, %cst_176 {dimension_numbers = #tpu.dot_dimension_numbers<[1], [0], [0], [1], [0, 0, 1, 1], [], []>} : vector<64x128xbf16>, vector<128x128xbf16>, vector<64x128xf32> -> vector<64x128xf32>
    %156 = arith.addf %151, %155 : vector<64x128xf32>
    %c0_177 = arith.constant 0 : index
    %c0_178 = arith.constant 0 : index
    %157 = vector.load %arg9[%c0_177, %c0_178] : memref<64x128xf32, #tpu.memory_space<vmem>>, vector<64x128xf32>
    tpu.vector_store %arg9[%c0_177, %c0_178], %156 {strides = array<i32>} : memref<64x128xf32, #tpu.memory_space<vmem>>, vector<64x128xf32>,
    %c2_179 = arith.constant 2 : index
    %c0_180 = arith.constant 0 : index
    %c0_181 = arith.constant 0 : index
    %158 = vector.load %arg10[%c2_179, %c0_180, %c0_181] : memref<10x10x128xf32, #tpu.memory_space<vmem>>, vector<8x8x128xf32>
    %159 = vector.shape_cast %158 : vector<8x8x128xf32> to vector<64x128xf32>
    %c0_182 = arith.constant 0 : index
    %c0_183 = arith.constant 0 : index
    %160 = vector.load %arg9[%c0_182, %c0_183] : memref<64x128xf32, #tpu.memory_space<vmem>>, vector<64x128xf32>
    %161 = arith.truncf %159 : vector<64x128xf32> to vector<64x128xbf16>
    %c6_184 = arith.constant 6 : index
    %c0_185 = arith.constant 0 : index
    %c0_186 = arith.constant 0 : index
    %162 = vector.load %arg4[%c6_184, %c0_185, %c0_186] : memref<9x128x128xbf16, #tpu.memory_space<vmem>>, vector<1x128x128xbf16>
    %163 = vector.shape_cast %162 : vector<1x128x128xbf16> to vector<128x128xbf16>
    %cst_187 = arith.constant dense<0.000000e+00> : vector<64x128xf32>
    %164 = tpu.matmul %161, %163, %cst_187 {dimension_numbers = #tpu.dot_dimension_numbers<[1], [0], [0], [1], [0, 0, 1, 1], [], []>} : vector<64x128xbf16>, vector<128x128xbf16>, vector<64x128xf32> -> vector<64x128xf32>
    %165 = arith.addf %160, %164 : vector<64x128xf32>
    %c0_188 = arith.constant 0 : index
    %c0_189 = arith.constant 0 : index
    %166 = vector.load %arg9[%c0_188, %c0_189] : memref<64x128xf32, #tpu.memory_space<vmem>>, vector<64x128xf32>
    tpu.vector_store %arg9[%c0_188, %c0_189], %165 {strides = array<i32>} : memref<64x128xf32, #tpu.memory_space<vmem>>, vector<64x128xf32>,
    %c2_190 = arith.constant 2 : index
    %c1_191 = arith.constant 1 : index
    %c0_192 = arith.constant 0 : index
    %167 = vector.load %arg10[%c2_190, %c1_191, %c0_192] : memref<10x10x128xf32, #tpu.memory_space<vmem>>, vector<8x8x128xf32>
    %168 = vector.shape_cast %167 : vector<8x8x128xf32> to vector<64x128xf32>
    %c0_193 = arith.constant 0 : index
    %c0_194 = arith.constant 0 : index
    %169 = vector.load %arg9[%c0_193, %c0_194] : memref<64x128xf32, #tpu.memory_space<vmem>>, vector<64x128xf32>
    %170 = arith.truncf %168 : vector<64x128xf32> to vector<64x128xbf16>
    %c7_195 = arith.constant 7 : index
    %c0_196 = arith.constant 0 : index
    %c0_197 = arith.constant 0 : index
    %171 = vector.load %arg4[%c7_195, %c0_196, %c0_197] : memref<9x128x128xbf16, #tpu.memory_space<vmem>>, vector<1x128x128xbf16>
    %172 = vector.shape_cast %171 : vector<1x128x128xbf16> to vector<128x128xbf16>
    %cst_198 = arith.constant dense<0.000000e+00> : vector<64x128xf32>
    %173 = tpu.matmul %170, %172, %cst_198 {dimension_numbers = #tpu.dot_dimension_numbers<[1], [0], [0], [1], [0, 0, 1, 1], [], []>} : vector<64x128xbf16>, vector<128x128xbf16>, vector<64x128xf32> -> vector<64x128xf32>
    %174 = arith.addf %169, %173 : vector<64x128xf32>
    %c0_199 = arith.constant 0 : index
    %c0_200 = arith.constant 0 : index
    %175 = vector.load %arg9[%c0_199, %c0_200] : memref<64x128xf32, #tpu.memory_space<vmem>>, vector<64x128xf32>
    tpu.vector_store %arg9[%c0_199, %c0_200], %174 {strides = array<i32>} : memref<64x128xf32, #tpu.memory_space<vmem>>, vector<64x128xf32>,
    %c2_201 = arith.constant 2 : index
    %c2_202 = arith.constant 2 : index
    %c0_203 = arith.constant 0 : index
    %176 = vector.load %arg10[%c2_201, %c2_202, %c0_203] : memref<10x10x128xf32, #tpu.memory_space<vmem>>, vector<8x8x128xf32>
    %177 = vector.shape_cast %176 : vector<8x8x128xf32> to vector<64x128xf32>
    %c0_204 = arith.constant 0 : index
    %c0_205 = arith.constant 0 : index
    %178 = vector.load %arg9[%c0_204, %c0_205] : memref<64x128xf32, #tpu.memory_space<vmem>>, vector<64x128xf32>
    %179 = arith.truncf %177 : vector<64x128xf32> to vector<64x128xbf16>
    %c8_206 = arith.constant 8 : index
    %c0_207 = arith.constant 0 : index
    %c0_208 = arith.constant 0 : index
    %180 = vector.load %arg4[%c8_206, %c0_207, %c0_208] : memref<9x128x128xbf16, #tpu.memory_space<vmem>>, vector<1x128x128xbf16>
    %181 = vector.shape_cast %180 : vector<1x128x128xbf16> to vector<128x128xbf16>
    %cst_209 = arith.constant dense<0.000000e+00> : vector<64x128xf32>
    %182 = tpu.matmul %179, %181, %cst_209 {dimension_numbers = #tpu.dot_dimension_numbers<[1], [0], [0], [1], [0, 0, 1, 1], [], []>} : vector<64x128xbf16>, vector<128x128xbf16>, vector<64x128xf32> -> vector<64x128xf32>
    %183 = arith.addf %178, %182 : vector<64x128xf32>
    %c0_210 = arith.constant 0 : index
    %c0_211 = arith.constant 0 : index
    %184 = vector.load %arg9[%c0_210, %c0_211] : memref<64x128xf32, #tpu.memory_space<vmem>>, vector<64x128xf32>
    tpu.vector_store %arg9[%c0_210, %c0_211], %183 {strides = array<i32>} : memref<64x128xf32, #tpu.memory_space<vmem>>, vector<64x128xf32>,
    %c0_212 = arith.constant 0 : index
    %c0_213 = arith.constant 0 : index
    %185 = vector.load %arg9[%c0_212, %c0_213] : memref<64x128xf32, #tpu.memory_space<vmem>>, vector<64x128xf32>
    %c0_214 = arith.constant 0 : index
    %c0_215 = arith.constant 0 : index
    %186 = vector.load %arg5[%c0_214, %c0_215] : memref<1x128xf32, #tpu.memory_space<vmem>>, vector<1x128xf32>
    %187 = vector.broadcast %186 : vector<1x128xf32> to vector<64x128xf32>
    %188 = arith.addf %185, %187 : vector<64x128xf32>
    %c0_216 = arith.constant 0 : index
    %c0_217 = arith.constant 0 : index
    %c0_218 = arith.constant 0 : index
    %c384_219 = arith.constant 384 : index
    %189 = vector.load %arg1[%c0_216, %c0_217, %c0_218, %c384_219] : memref<1x9x9x512xf32, #tpu.memory_space<vmem>>, vector<1x8x8x128xf32>
    %190 = vector.shape_cast %189 : vector<1x8x8x128xf32> to vector<8x8x128xf32>
    %191 = vector.shape_cast %190 : vector<8x8x128xf32> to vector<64x128xf32>
    %192 = arith.truncf %191 : vector<64x128xf32> to vector<64x128xbf16>
    %c0_220 = arith.constant 0 : index
    %c0_221 = arith.constant 0 : index
    %193 = vector.load %arg6[%c0_220, %c0_221] : memref<128x128xbf16, #tpu.memory_space<vmem>>, vector<128x128xbf16>
    %cst_222 = arith.constant dense<0.000000e+00> : vector<64x128xf32>
    %194 = tpu.matmul %192, %193, %cst_222 {dimension_numbers = #tpu.dot_dimension_numbers<[1], [0], [0], [1], [0, 0, 1, 1], [], []>} : vector<64x128xbf16>, vector<128x128xbf16>, vector<64x128xf32> -> vector<64x128xf32>
    %c0_223 = arith.constant 0 : index
    %c0_224 = arith.constant 0 : index
    %195 = vector.load %arg7[%c0_223, %c0_224] : memref<1x128xf32, #tpu.memory_space<vmem>>, vector<1x128xf32>
    %196 = vector.broadcast %195 : vector<1x128xf32> to vector<64x128xf32>
    %197 = arith.addf %194, %196 : vector<64x128xf32>
    %198 = arith.addf %188, %197 : vector<64x128xf32>
    %cst_225 = arith.constant 0.000000e+00 : f32
    %199 = vector.broadcast %cst_225 : f32 to vector<64x128xf32>
    %200 = arith.maximumf %198, %199 : vector<64x128xf32>
    %c0_226 = arith.constant 0 : index
    %c0_227 = arith.constant 0 : index
    %c0_228 = arith.constant 0 : index
    %201 = vector.load %arg8[%c0_226, %c0_227, %c0_228] : memref<1x64x128xf32, #tpu.memory_space<vmem>>, vector<1x64x128xf32>
    %202 = vector.shape_cast %201 : vector<1x64x128xf32> to vector<64x128xf32>
    %203 = vector.shape_cast %200 : vector<64x128xf32> to vector<1x64x128xf32>
    tpu.vector_store %arg8[%c0_226, %c0_227, %c0_228], %203 {strides = array<i32>} : memref<1x64x128xf32, #tpu.memory_space<vmem>>, vector<1x64x128xf32>,
    return
  }
  func.func @transform_0(%arg0: i32) -> (i32, i32, i32, i32) {
    %c0_i32 = arith.constant 0 : i32
    %c0_i32_0 = arith.constant 0 : i32
    %c0_i32_1 = arith.constant 0 : i32
    %c0_i32_2 = arith.constant 0 : i32
    return %arg0, %c0_i32, %c0_i32_0, %c0_i32_1 : i32, i32, i32, i32
  }
  func.func @transform_1(%arg0: i32) -> (i32, i32, i32) {
    %c0_i32 = arith.constant 0 : i32
    %c0_i32_0 = arith.constant 0 : i32
    %c0_i32_1 = arith.constant 0 : i32
    %c0_i32_2 = arith.constant 0 : i32
    return %c0_i32, %c0_i32_0, %c0_i32_1 : i32, i32, i32
  }
  func.func @transform_2(%arg0: i32) -> (i32, i32) {
    %c0_i32 = arith.constant 0 : i32
    %c0_i32_0 = arith.constant 0 : i32
    %c0_i32_1 = arith.constant 0 : i32
    return %c0_i32, %c0_i32_0 : i32, i32
  }
  func.func @transform_3(%arg0: i32) -> (i32, i32, i32) {
    %c0_i32 = arith.constant 0 : i32
    %c0_i32_0 = arith.constant 0 : i32
    %c0_i32_1 = arith.constant 0 : i32
    %c0_i32_2 = arith.constant 0 : i32
    return %c0_i32, %c0_i32_0, %c0_i32_1 : i32, i32, i32
  }
  func.func @transform_4(%arg0: i32) -> (i32, i32) {
    %c0_i32 = arith.constant 0 : i32
    %c0_i32_0 = arith.constant 0 : i32
    %c0_i32_1 = arith.constant 0 : i32
    return %c0_i32, %c0_i32_0 : i32, i32
  }
  func.func @transform_5(%arg0: i32) -> (i32, i32) {
    %c0_i32 = arith.constant 0 : i32
    %c0_i32_0 = arith.constant 0 : i32
    %c0_i32_1 = arith.constant 0 : i32
    return %c0_i32, %c0_i32_0 : i32, i32
  }
  func.func @transform_6(%arg0: i32) -> (i32, i32) {
    %c0_i32 = arith.constant 0 : i32
    %c0_i32_0 = arith.constant 0 : i32
    %c0_i32_1 = arith.constant 0 : i32
    return %c0_i32, %c0_i32_0 : i32, i32
  }
  func.func @transform_7(%arg0: i32) -> (i32, i32, i32) {
    %c0_i32 = arith.constant 0 : i32
    %c0_i32_0 = arith.constant 0 : i32
    %c0_i32_1 = arith.constant 0 : i32
    return %arg0, %c0_i32, %c0_i32_0 : i32, i32, i32
  }
}

</mosaic_0001>

<bundles_post_ra>
// kernel: basic_block_forward.1
= control target key start
LH: loop header
LB: loop body
LE: loop exit
PB: predicated region body
PF: predicated region fallthrough
CT: control target
= control target key end

     0   :  { %s5293_s24 = smov 0   ;;  %s6152_s0 = inlined_call_operand.vmem [shape: f32[2,9,9,512], index: 0, kind: input, shape index: {}]   ;;  %s6153_s1 = inlined_call_operand.vmem [shape: bf16[9,128,128], index: 1, kind: input, shape index: {}]   ;;  %s6154_s2 = inlined_call_operand.vmem [shape: f32[1,128], index: 2, kind: input, shape index: {}]   ;;  %s6155_s3 = inlined_call_operand.vmem [shape: bf16[9,128,128], index: 3, kind: input, shape index: {}]   ;;  %s6156_s4 = inlined_call_operand.vmem [shape: f32[1,128], index: 4, kind: input, shape index: {}]   ;;  %s6157_s5 = inlined_call_operand.vmem [shape: bf16[128,128], index: 5, kind: input, shape index: {}]   ;;  %s6158_s6 = inlined_call_operand.vmem [shape: f32[1,128], index: 6, kind: input, shape index: {}]   ;;  %s6159_s7 = inlined_call_operand.vmem [shape: f32[2,64,128], index: 7, kind: output, shape index: {}]  }
   0x1 LB: > { %s3763_s25 = sadd.s32 4294967295, %s5250_s24   ;;  %p3767_p0 = scmp.ge.s32.totalorder %s5250_s24, 1  ;;  %s5250_s24 = sphi %s5293_s24, %s17_s24  }
   0x2   : > { %p237_p1 = scmp.lt.s32.totalorder %s5250_s24, 3 }
   0x4   : > { %p238_p2 = pnand %p3767_p0, %p237_p1 }
   0x5   : > { %v5079_v0 = vld [vmem:[%s6153_s1] sm:$0xff] (!%p238_p2)   ;;  %p269_p3 = scmp.lt.s32.totalorder (!%p238_p2), %s3763_s25, 1  ;;  %v5080_v1 = vld [vmem:[%s6153_s1 + $0x8] sm:$0xff] (!%p238_p2)   ;;  %v5081_v2 = vld [vmem:[%s6153_s1 + $0x10] sm:$0xff] (!%p238_p2)   ;;  %vm659_vm0 = vcmask (!%p238_p2), 1046528  }
   0x6   : > { %241 = sbr.rel (%p238_p2) target bundleno = 1032 (0x408), region = 48  ;;  %4445 = vmatprep.subr.bf16.mxu0 (!%p238_p2), %v5079_v0  ;;  %v5082_v3 = vld [vmem:[%s6153_s1 + $0x18] sm:$0xff] (!%p238_p2)   ;;  %v5083_v7 = vld [vmem:[%s6153_s1 + $0x20] sm:$0xff] (!%p238_p2)   ;;  %v5084_v8 = vld [vmem:[%s6153_s1 + $0x28] sm:$0xff] (!%p238_p2)  }
   0x7   : > { %4446 = vmatpush3.bf16.msra.mxu0 (!%p238_p2), %v5079_v0  ;;  %v5085_v9 = vld [vmem:[%s6153_s1 + $0x30] sm:$0xff] (!%p238_p2)   ;;  %v5086_v10 = vld [vmem:[%s6153_s1 + $0x38] sm:$0xff] (!%p238_p2)   ;;  %v5087_v11 = vld [vmem:[%s6153_s1 + $0x40] sm:$0xff] (!%p238_p2)  }
   0x8   : > { %4447 = vmatprep.subr.bf16.mxu0 (!%p238_p2), %v5080_v1  ;;  %v5088_v18 = vld [vmem:[%s6153_s1 + $0x48] sm:$0xff] (!%p238_p2)   ;;  %v5089_v20 = vld [vmem:[%s6153_s1 + $0x50] sm:$0xff] (!%p238_p2)   ;;  %v5090_v26 = vld [vmem:[%s6153_s1 + $0x58] sm:$0xff] (!%p238_p2)  }
   0x9   : > { %v5091_v27 = vld [vmem:[%s6153_s1 + $0x60] sm:$0xff] (!%p238_p2)   ;;  %v5092_v28 = vld [vmem:[%s6153_s1 + $0x68] sm:$0xff] (!%p238_p2)   ;;  %v5093_v29 = vld [vmem:[%s6153_s1 + $0x70] sm:$0xff] (!%p238_p2)  }
   0xa   : > { %v5094_v30 = vld [vmem:[%s6153_s1 + $0x78] sm:$0xff] (!%p238_p2)   ;;  %v5095_v33 = vld [vmem:[%s6153_s1 + $0x80] sm:$0xff] (!%p238_p2)   ;;  %v5096_v41 = vld [vmem:[%s6153_s1 + $0x88] sm:$0xff] (!%p238_p2)  }
   0xb   : > { %4448 = vmatpush3.bf16.msra.mxu0 (!%p238_p2), %v5080_v1  ;;  %v5097_v49 = vld [vmem:[%s6153_s1 + $0x90] sm:$0xff] (!%p238_p2)   ;;  %v5098_v54 = vld [vmem:[%s6153_s1 + $0x98] sm:$0xff] (!%p238_p2)   ;;  %v5099_v55 = vld [vmem:[%s6153_s1 + $0xa0] sm:$0xff] (!%p238_p2)  }
   0xc   : > { %4449 = vmatprep.subr.bf16.mxu0 (!%p238_p2), %v5081_v2  ;;  %v5100_v56 = vld [vmem:[%s6153_s1 + $0xa8] sm:$0xff] (!%p238_p2)   ;;  %v5101_v61 = vld [vmem:[%s6153_s1 + $0xb0] sm:$0xff] (!%p238_p2)  }
   0xd   : > { %s6161_s25 = smov (!%p269_p3, %s3763_s25), 1 }
   0xe   : > { %s5069_s9 = smul.u32 576, %s6161_s25  ;;  %s4216_s16 = sshll.u32 %s6161_s25, 6 }
   0xf   : > { %4450 = vmatpush3.bf16.msra.mxu0 %v5081_v2  ;;  %s278_s19 = scalar_lea.vmem %s6159_s7, %s4216_s16 }
  0x10   : > { %s5316_s12 = scalar_lea.vmem %s6152_s0, %s5069_s9  ;;  %4451 = vmatprep.subr.bf16.mxu0 %v5082_v3 }
  0x11   : > { %v296_v4 = vld [vmem:[%s5316_s12] sm:$0xff]  ;;  %v461_v22 = vld [vmem:[%s5316_s12 + $0x8] sm:$0xff] }
  0x12   : > { %v297_v5 = vld [vmem:[%s5316_s12 + $0x40] sm:$0xff]  ;;  %v462_v23 = vld [vmem:[%s5316_s12 + $0x48] sm:$0xff] }
  0x13   : > { %v304_v6 = vpack.c.bf16 %v297_v5, %v296_v4  ;;  %4452 = vmatpush3.bf16.msra.mxu0 %v5082_v3  ;;  %v298_v12 = vld [vmem:[%s5316_s12 + $0x80] sm:$0xff]  ;;  %v469_v25 = vpack.c.bf16 %v462_v23, %v461_v22  ;;  %v463_v31 = vld [vmem:[%s5316_s12 + $0x88] sm:$0xff] }
  0x14   : > { %4453 = vmatprep.subr.bf16.mxu0 %v5083_v7  ;;  %v299_v13 = vld [vmem:[%s5316_s12 + $0xc0] sm:$0xff]  ;;  %v464_v32 = vld [vmem:[%s5316_s12 + $0xc8] sm:$0xff] }
  0x15   : > { %4461 = vmatprep.mubr.bf16.mxu0 %v304_v6  ;;  %v300_v14 = vld [vmem:[%s5316_s12 + $0x100] sm:$0xff]  ;;  %v305_v16 = vpack.c.bf16 %v299_v13, %v298_v12  ;;  %v465_v34 = vld [vmem:[%s5316_s12 + $0x108] sm:$0xff]  ;;  %v470_v40 = vpack.c.bf16 %v464_v32, %v463_v31  ;;  %v5102_v6 = vld [vmem:[%s6153_s1 + $0xb8] sm:$0xff]  }
  0x16   : > { %v301_v15 = vld [vmem:[%s5316_s12 + $0x140] sm:$0xff]  ;;  %v466_v35 = vld [vmem:[%s5316_s12 + $0x148] sm:$0xff]  ;;  %v851_v31 = vld [vmem:[%s5316_s12 + $0x50] sm:$0xff] }
  0x17   : > { %4454 = vmatpush3.bf16.msra.mxu0 %v5083_v7  ;;  %v306_v17 = vpack.c.bf16 %v301_v15, %v300_v14  ;;  %v302_v19 = vld [vmem:[%s5316_s12 + $0x180] sm:$0xff]  ;;  %v471_v42 = vpack.c.bf16 %v466_v35, %v465_v34  ;;  %v5382_v47 = vld [vmem:[%s5316_s12 + $0x188] sm:$0xff] }
  0x18   : > { %4455 = vmatprep.subr.bf16.mxu0 %v5084_v8  ;;  %v303_v21 = vld [vmem:[%s5316_s12 + $0x1c0] sm:$0xff]  ;;  %v468_v48 = vld [vmem:[%s5316_s12 + $0x1c8] sm:$0xff] }
  0x19   : > { %v307_v24 = vpack.c.bf16 %v303_v21, %v302_v19  ;;  %v627_v36 = vld [vmem:[%s5316_s12] sm:$0xfe]  ;;  %v628_v37 = vld [vmem:[%s5316_s12 + $0x20] sm:$0x1]  ;;  %v472_v52 = vpack.c.bf16 %v468_v48, %v5382_v47  ;;  %v5104_v23 = vld [vmem:[%s6153_s1 + $0xc8] sm:$0xff]  }
  0x1a   : > { %v629_v38 = vld [vmem:[%s5316_s12 + $0x40] sm:$0xfe]  ;;  %v630_v39 = vld [vmem:[%s5316_s12 + $0x60] sm:$0x1]  ;;  %v660_v43 = vrot.slane %v627_v36, 1  ;;  %v661_v44 = vrot.slane %v628_v37, 1 }
  0x1b   : > { %4456 = vmatpush3.bf16.msra.mxu0 %v5084_v8  ;;  %v663_v45 = vrot.slane %v629_v38, 1  ;;  %v664_v46 = vrot.slane %v630_v39, 1  ;;  %v631_v57 = vld [vmem:[%s5316_s12 + $0x80] sm:$0xfe]  ;;  %v632_v58 = vld [vmem:[%s5316_s12 + $0xa0] sm:$0x1] }
  0x1c   : > { %4457 = vmatprep.subr.bf16.mxu0 %v5085_v9  ;;  %v662_v50 = vsel %vm659_vm0, %v660_v43, %v661_v44  ;;  %v633_v59 = vld [vmem:[%s5316_s12 + $0xc0] sm:$0xfe]  ;;  %v634_v60 = vld [vmem:[%s5316_s12 + $0xe0] sm:$0x1]  ;;  %v666_v2 = vrot.slane %v631_v57, 1  ;;  %v667_v3 = vrot.slane %v632_v58, 1 }
  0x1d   : > { %v665_v51 = vsel %vm659_vm0, %v663_v45, %v664_v46  ;;  %v635_v62 = vld [vmem:[%s5316_s12 + $0x100] sm:$0xfe]  ;;  %v636_v63 = vld [vmem:[%s5316_s12 + $0x120] sm:$0x1]  ;;  %v669_v4 = vrot.slane %v633_v59, 1  ;;  %v670_v5 = vrot.slane %v634_v60, 1 }
  0x1e   : > { %v692_v53 = vpack.c.bf16 %v665_v51, %v662_v50  ;;  %v637_v0 = vld [vmem:[%s5316_s12 + $0x140] sm:$0xfe]  ;;  %v638_v1 = vld [vmem:[%s5316_s12 + $0x160] sm:$0x1]  ;;  %v672_v7 = vrot.slane %v635_v62, 1  ;;  %v673_v8 = vrot.slane %v636_v63, 1 }
  0x1f   : > { %4458 = vmatpush3.bf16.msra.mxu0 %v5085_v9  ;;  %v675_v9 = vrot.slane %v637_v0, 1  ;;  %v640_v12 = vld [vmem:[%s5316_s12 + $0x1a0] sm:$0x1]  ;;  %v641_v14 = vld [vmem:[%s5316_s12 + $0x1c0] sm:$0xfe]  ;;  %v5108_v36 = vld [vmem:[%s6153_s1 + $0xe8] sm:$0xff]  }
  0x20   : > { %4459 = vmatprep.subr.bf16.mxu0 %v5086_v10  ;;  %v5103_v13 = vld [vmem:[%s6153_s1 + $0xc0] sm:$0xff]   ;;  %v679_v19 = vrot.slane %v640_v12, 1  ;;  %v5109_v37 = vld [vmem:[%s6153_s1 + $0xf0] sm:$0xff]   ;;  %v5110_v38 = vld [vmem:[%s6153_s1 + $0xf8] sm:$0xff]  }
  0x21   : > { %v642_v15 = vld [vmem:[%s5316_s12 + $0x1e0] sm:$0x1]  ;;  %v852_v39 = vld [vmem:[%s5316_s12 + $0x90] sm:$0xff]  ;;  %v5112_v45 = vld [vmem:[%s6153_s1 + $0x108] sm:$0xff]  }
  0x22   : > { %v5107_v35 = vld [vmem:[%s6153_s1 + $0xe0] sm:$0xff]   ;;  %v855_v43 = vld [vmem:[%s5316_s12 + $0x150] sm:$0xff]  ;;  %v1016_v51 = vld [vmem:[%s5316_s12 + $0x18] sm:$0xff] }
  0x23   : > { %4460 = vmatpush3.bf16.msra.mxu0 %v5086_v10  ;;  %v676_v10 = vrot.slane %v638_v1, 1  ;;  %v856_v48 = vld [vmem:[%s5316_s12 + $0x190] sm:$0xff]  ;;  %v5116_v57 = vld [vmem:[%s6153_s1 + $0x128] sm:$0xff]   ;;  %v5118_v59 = vld [vmem:[%s6153_s1 + $0x138] sm:$0xff]  }
  0x24   : > { %4469 = vmatprep.subr.bf16.mxu0 %v5087_v11  ;;  %v5113_v50 = vld [vmem:[%s6153_s1 + $0x110] sm:$0xff]   ;;  %v5119_v60 = vld [vmem:[%s6153_s1 + $0x140] sm:$0xff]   ;;  %v1019_v62 = vld [vmem:[%s5316_s12 + $0xd8] sm:$0xff] }
  0x25   : > { %v677_v21 = vsel %vm659_vm0, %v675_v9, %v676_v10  ;;  %v5117_v58 = vld [vmem:[%s6153_s1 + $0x130] sm:$0xff]   ;;  %v1020_v63 = vld [vmem:[%s5316_s12 + $0x118] sm:$0xff] }
  0x26   : > { %4462 = vmatmul.mubr.bf16.vlgmr.msra.gmra.mrb[0].mxu0 %v305_v16  ;;  %v668_v16 = vsel %vm659_vm0, %v666_v2, %v667_v3  ;;  %v1021_v0 = vld [vmem:[%s5316_s12 + $0x158] sm:$0xff]  ;;  %v1182_v1 = vld [vmem:[%s5316_s12 + $0x10] sm:$0xfe]  ;;  %v1183_v2 = vld [vmem:[%s5316_s12 + $0x30] sm:$0x1] }
  0x27   : > { %4470 = vmatpush3.bf16.msra.mxu0 %v5087_v11  ;;  %4465 = vmatprep.mubr.bf16.mxu0 %v306_v17  ;;  %v639_v11 = vld [vmem:[%s5316_s12 + $0x180] sm:$0xfe]  ;;  %v671_v17 = vsel %vm659_vm0, %v669_v4, %v670_v5  ;;  %v1184_v3 = vld [vmem:[%s5316_s12 + $0x50] sm:$0xfe]  ;;  %v1185_v4 = vld [vmem:[%s5316_s12 + $0x70] sm:$0x1] }
  0x28   : > { %4471 = vmatprep.subr.bf16.mxu0 %v5088_v18  ;;  %v693_v22 = vpack.c.bf16 %v671_v17, %v668_v16  ;;  %v1215_v9 = vrot.slane %v1183_v2, 1  ;;  %v1217_v10 = vrot.slane %v1184_v3, 1  ;;  %v1022_v12 = vld [vmem:[%s5316_s12 + $0x198] sm:$0xff]  ;;  %v5232_v2 = vld [vmem:[%s5316_s12 + $0x80] sm:$0xff] }
  0x2b   : > { %4472 = vmatpush3.bf16.msra.mxu0 %v5088_v18  ;;  %v678_v18 = vrot.slane %v639_v11, 1  ;;  %v1218_v11 = vrot.slane %v1185_v4, 1  ;;  %v5130_v4 = vld [vmem:[%s6153_s1 + $0x198] sm:$0xff]  }
  0x2c   : > { %4473 = vmatprep.subr.bf16.mxu0 %v5089_v20 }
  0x2d   : > { %v1219_v16 = vsel %vm659_vm0, %v1217_v10, %v1218_v11  ;;  %v5233_v10 = vld [vmem:[%s5316_s12 + $0xc0] sm:$0xff] }
  0x2e   : > { %4466 = vmatmul.mubr.bf16.gmra.mrb[4].mxu0 %v307_v24  ;;  %v5234_v11 = vld [vmem:[%s5316_s12 + $0x100] sm:$0xff] }
  0x2f   : > { %4474 = vmatpush3.bf16.msra.mxu0 %v5089_v20  ;;  %4485 = vmatprep.mubr.bf16.mxu0 %v469_v25  ;;  %v674_v20 = vsel %vm659_vm0, %v672_v7, %v673_v8  ;;  %v681_v25 = vrot.slane %v641_v14, 1  ;;  %v5120_v7 = vld [vmem:[%s6153_s1 + $0x148] sm:$0xff]   ;;  %v1214_v8 = vrot.slane %v1182_v1, 1  ;;  %v5121_v14 = vld [vmem:[%s6153_s1 + $0x150] sm:$0xff]   ;;  %v5231_v1 = vld [vmem:[%s5316_s12 + $0x40] sm:$0xff] }
  0x30   : > { %4475 = vmatprep.subr.bf16.mxu0 %v5090_v26  ;;  %v694_v24 = vpack.c.bf16 %v677_v21, %v674_v20  ;;  %v5151_v20 = vld [vmem:[%s6155_s3] sm:$0xff]   ;;  %v5152_v21 = vld [vmem:[%s6155_s3 + $0x8] sm:$0xff]   ;;  %v1413_v3 = vpack.c.bf16 %v5232_v2, %v5231_v1 }
  0x31   : > { %4661 = vmatprep.subr.bf16.mxu1 %v5151_v20 }
  0x32   : > { %4662 = vmatpush3.bf16.msra.mxu1 %v5151_v20 }
  0x33   : > { %4476 = vmatpush3.bf16.msra.mxu0 %v5090_v26  ;;  %v682_v26 = vrot.slane %v642_v15, 1  ;;  %v1216_v15 = vsel %vm659_vm0, %v1214_v8, %v1215_v9  ;;  %4663 = vmatprep.subr.bf16.mxu1 %v5152_v21  ;;  %v5134_v8 = vld [vmem:[%s6153_s1 + $0x1b8] sm:$0xff]   ;;  %v5135_v9 = vld [vmem:[%s6153_s1 + $0x1c0] sm:$0xff]  }
  0x34   : > { %4477 = vmatprep.subr.bf16.mxu0 %v5091_v27 }
  0x36   : > { %4664 = vmatpush3.bf16.msra.mxu1 %v5152_v21  ;;  %v5238_v21 = vld [vmem:[%s5316_s12 + $0x48] sm:$0xff] }
  0x37   : > { %4478 = vmatpush3.bf16.msra.mxu0 %v5091_v27  ;;  %v5105_v27 = vld [vmem:[%s6153_s1 + $0xd0] sm:$0xff]  }
  0x38   : > { %4479 = vmatprep.subr.bf16.mxu0 %v5092_v28 }
  0x3b   : > { %4480 = vmatpush3.bf16.msra.mxu0 %v5092_v28  ;;  %v850_v28 = vld [vmem:[%s5316_s12 + $0x10] sm:$0xff] }
  0x3c   : > { %4481 = vmatprep.subr.bf16.mxu0 %v5093_v29  ;;  %v858_v34 = vpack.c.bf16 %v851_v31, %v850_v28  ;;  %v1187_v28 = vld [vmem:[%s5316_s12 + $0xb0] sm:$0x1]  ;;  %v1190_v31 = vld [vmem:[%s5316_s12 + $0x110] sm:$0xfe] }
  0x3f   : > { %4482 = vmatpush3.bf16.msra.mxu0 %v5093_v29  ;;  %v680_v29 = vsel %vm659_vm0, %v678_v18, %v679_v19  ;;  %v1246_v18 = vpack.c.bf16 %v1219_v16, %v1216_v15  ;;  %v5122_v19 = vld [vmem:[%s6153_s1 + $0x158] sm:$0xff]   ;;  %v5136_v16 = vld [vmem:[%s6153_s1 + $0x1c8] sm:$0xff]  }
  0x40   : > { %4483 = vmatprep.subr.bf16.mxu0 %v5094_v30 }
  0x43   : > { %4484 = vmatpush3.bf16.msra.mxu0 %v5094_v30  ;;  %v683_v30 = vsel %vm659_vm0, %v681_v25, %v682_v26  ;;  %v5154_v25 = vld [vmem:[%s6155_s3 + $0x18] sm:$0xff]   ;;  %v5125_v26 = vld [vmem:[%s6153_s1 + $0x170] sm:$0xff]  }
  0x44   : > { %4493 = vmatprep.subr.bf16.mxu0 %v5095_v33  ;;  %v695_v32 = vpack.c.bf16 %v683_v30, %v680_v29  ;;  %v1188_v29 = vld [vmem:[%s5316_s12 + $0xd0] sm:$0xfe]  ;;  %v1189_v30 = vld [vmem:[%s5316_s12 + $0xf0] sm:$0x1] }
  0x46   : > { %4486 = vmatmul.mubr.bf16.vlgmr.msra.gmra.mrb[0].mxu0 %v470_v40  ;;  %v853_v40 = vld [vmem:[%s5316_s12 + $0xd0] sm:$0xff] }
  0x47   : > { %4494 = vmatpush3.bf16.msra.mxu0 %v5095_v33  ;;  %4489 = vmatprep.mubr.bf16.mxu0 %v471_v42  ;;  %v5106_v33 = vld [vmem:[%s6153_s1 + $0xd8] sm:$0xff]   ;;  %v854_v42 = vld [vmem:[%s5316_s12 + $0x110] sm:$0xff]  ;;  %v859_v44 = vpack.c.bf16 %v853_v40, %v852_v39  ;;  %v1226_v40 = vrot.slane %v1190_v31, 1  ;;  %v3964_v31 = vld [vmem:[%s5316_s12 + $0x60] sm:$0x1] }
  0x48   : > { %4495 = vmatprep.subr.bf16.mxu0 %v5096_v41  ;;  %v860_v46 = vpack.c.bf16 %v855_v43, %v854_v42  ;;  %v5126_v39 = vld [vmem:[%s6153_s1 + $0x178] sm:$0xff]  }
  0x4b   : > { %4496 = vmatpush3.bf16.msra.mxu0 %v5096_v41  ;;  %v5111_v41 = vld [vmem:[%s6153_s1 + $0x100] sm:$0xff]  }
  0x4c   : > { %4497 = vmatprep.subr.bf16.mxu0 %v5097_v49 }
  0x4e   : > { %4490 = vmatmul.mubr.bf16.gmra.mrb[4].mxu0 %v472_v52  ;;  %v1017_v52 = vld [vmem:[%s5316_s12 + $0x58] sm:$0xff] }
  0x4f   : > { %4498 = vmatpush3.bf16.msra.mxu0 %v5097_v49  ;;  %4509 = vmatprep.mubr.bf16.mxu0 %v692_v53  ;;  %v857_v49 = vld [vmem:[%s5316_s12 + $0x1d0] sm:$0xff] }
  0x50   : > { %4499 = vmatprep.subr.bf16.mxu0 %v5098_v54  ;;  %v861_v53 = vpack.c.bf16 %v857_v49, %v856_v48  ;;  %v1194_v48 = vld [vmem:[%s5316_s12 + $0x190] sm:$0xfe] }
  0x53   : > { %4500 = vmatpush3.bf16.msra.mxu0 %v5098_v54  ;;  %v5114_v54 = vld [vmem:[%s6153_s1 + $0x118] sm:$0xff]  }
  0x54   : > { %4501 = vmatprep.subr.bf16.mxu0 %v5099_v55 }
  0x57   : > { %4502 = vmatpush3.bf16.msra.mxu0 %v5099_v55  ;;  %v1024_v55 = vpack.c.bf16 %v1017_v52, %v1016_v51  ;;  %v1195_v51 = vld [vmem:[%s5316_s12 + $0x1b0] sm:$0x1]  ;;  %v1196_v52 = vld [vmem:[%s5316_s12 + $0x1d0] sm:$0xfe] }
  0x58   : > { %4503 = vmatprep.subr.bf16.mxu0 %v5100_v56 }
  0x5b   : > { %4504 = vmatpush3.bf16.msra.mxu0 %v5100_v56  ;;  %v5115_v56 = vld [vmem:[%s6153_s1 + $0x120] sm:$0xff]  }
  0x5c   : > { %4505 = vmatprep.subr.bf16.mxu0 %v5101_v61 }
  0x5f   : > { %4506 = vmatpush3.bf16.msra.mxu0 %v5101_v61  ;;  %v1018_v61 = vld [vmem:[%s5316_s12 + $0x98] sm:$0xff] }
  0x60   : > { %4507 = vmatprep.subr.bf16.mxu0 %v5102_v6  ;;  %v1025_v5 = vpack.c.bf16 %v1019_v62, %v1018_v61 }
  0x63   : > { %4508 = vmatpush3.bf16.msra.mxu0 %v5102_v6  ;;  %v1026_v6 = vpack.c.bf16 %v1021_v0, %v1020_v63  ;;  %v5129_v63 = vld [vmem:[%s6153_s1 + $0x190] sm:$0xff]  }
  0x64   : > { %4517 = vmatprep.subr.bf16.mxu0 %v5103_v13 }
  0x66   : > { %4510 = vmatmul.mubr.bf16.vlgmr.msra.gmra.mrb[0].mxu0 %v693_v22  ;;  %v5123_v22 = vld [vmem:[%s6153_s1 + $0x160] sm:$0xff]  }
  0x67   : > { %4518 = vmatpush3.bf16.msra.mxu0 %v5103_v13  ;;  %4513 = vmatprep.mubr.bf16.mxu0 %v694_v24  ;;  %v1023_v13 = vld [vmem:[%s5316_s12 + $0x1d8] sm:$0xff]  ;;  %v5124_v24 = vld [vmem:[%s6153_s1 + $0x168] sm:$0xff]  }
  0x68   : > { %4519 = vmatprep.subr.bf16.mxu0 %v5104_v23  ;;  %v1027_v17 = vpack.c.bf16 %v1023_v13, %v1022_v12  ;;  %v1414_v12 = vpack.c.bf16 %v5234_v11, %v5233_v10  ;;  %v5235_v13 = vld [vmem:[%s5316_s12 + $0x140] sm:$0xff] }
  0x69   : > { %v3975_v10 = vld [vmem:[%s5316_s12 + $0x1c0] sm:$0xfe] }
  0x6b   : > { %4520 = vmatpush3.bf16.msra.mxu0 %v5104_v23  ;;  %v5153_v23 = vld [vmem:[%s6155_s3 + $0x10] sm:$0xff]  }
  0x6c   : > { %4521 = vmatprep.subr.bf16.mxu0 %v5105_v27  ;;  %4665 = vmatprep.subr.bf16.mxu1 %v5153_v23 }
  0x6d   : > { %4666 = vmatpush3.bf16.msra.mxu1 %v5153_v23 }
  0x6e   : > { %4514 = vmatmul.mubr.bf16.gmra.mrb[4].mxu0 %v695_v32  ;;  %v1191_v32 = vld [vmem:[%s5316_s12 + $0x130] sm:$0x1]  ;;  %4667 = vmatprep.subr.bf16.mxu1 %v5154_v25 }
  0x6f   : > { %4522 = vmatpush3.bf16.msra.mxu0 %v5105_v27  ;;  %4533 = vmatprep.mubr.bf16.mxu0 %v858_v34  ;;  %v1186_v27 = vld [vmem:[%s5316_s12 + $0x90] sm:$0xfe]  ;;  %v1193_v34 = vld [vmem:[%s5316_s12 + $0x170] sm:$0x1] }
  0x70   : > { %4523 = vmatprep.subr.bf16.mxu0 %v5106_v33  ;;  %v1230_v43 = vrot.slane %v1193_v34, 1  ;;  %v5240_v34 = vld [vmem:[%s5316_s12 + $0xc8] sm:$0xff] }
  0x71   : > { %4668 = vmatpush3.bf16.msra.mxu1 %v5154_v25  ;;  %v5139_v25 = vld [vmem:[%s6153_s1 + $0x1e0] sm:$0xff]  }
  0x73   : > { %4524 = vmatpush3.bf16.msra.mxu0 %v5106_v33  ;;  %v1192_v33 = vld [vmem:[%s5316_s12 + $0x150] sm:$0xfe] }
  0x74   : > { %4525 = vmatprep.subr.bf16.mxu0 %v5107_v35  ;;  %v1229_v42 = vrot.slane %v1192_v33, 1  ;;  %v3966_v33 = vld [vmem:[%s5316_s12 + $0xa0] sm:$0x1] }
  0x77   : > { %4526 = vmatpush3.bf16.msra.mxu0 %v5107_v35  ;;  %v1220_v35 = vrot.slane %v1186_v27, 1  ;;  %v5141_v27 = vld [vmem:[%s6153_s1 + $0x1f0] sm:$0xff]  }
  0x78   : > { %4527 = vmatprep.subr.bf16.mxu0 %v5108_v36 }
  0x7b   : > { %4528 = vmatpush3.bf16.msra.mxu0 %v5108_v36  ;;  %v1221_v36 = vrot.slane %v1187_v28, 1  ;;  %v5142_v28 = vld [vmem:[%s6153_s1 + $0x1f8] sm:$0xff]  }
  0x7c   : > { %4529 = vmatprep.subr.bf16.mxu0 %v5109_v37 }
  0x7f   : > { %4530 = vmatpush3.bf16.msra.mxu0 %v5109_v37  ;;  %v1223_v37 = vrot.slane %v1188_v29, 1  ;;  %v5143_v29 = vld [vmem:[%s6153_s1 + $0x200] sm:$0xff]  }
  0x80   : > { %4531 = vmatprep.subr.bf16.mxu0 %v5110_v38 }
  0x83   : > { %4532 = vmatpush3.bf16.msra.mxu0 %v5110_v38  ;;  %v1224_v38 = vrot.slane %v1189_v30, 1  ;;  %v3963_v30 = vld [vmem:[%s5316_s12 + $0x40] sm:$0xfe] }
  0x84   : > { %4541 = vmatprep.subr.bf16.mxu0 %v5111_v41 }
  0x86   : > { %4534 = vmatmul.mubr.bf16.vlgmr.msra.gmra.mrb[0].mxu0 %v859_v44  ;;  %v5127_v44 = vld [vmem:[%s6153_s1 + $0x180] sm:$0xff]  }
  0x87   : > { %4542 = vmatpush3.bf16.msra.mxu0 %v5111_v41  ;;  %4537 = vmatprep.mubr.bf16.mxu0 %v860_v46  ;;  %v1227_v41 = vrot.slane %v1191_v32, 1  ;;  %v1225_v46 = vsel %vm659_vm0, %v1223_v37, %v1224_v38  ;;  %v3965_v32 = vld [vmem:[%s5316_s12 + $0x80] sm:$0xfe]  ;;  %v5242_v37 = vld [vmem:[%s5316_s12 + $0x148] sm:$0xff] }
  0x88   : > { %4543 = vmatprep.subr.bf16.mxu0 %v5112_v45  ;;  %v1581_v38 = vpack.c.bf16 %v5382_v47, %v5242_v37 }
  0x89   : > { %v1228_v49 = vsel %vm659_vm0, %v1226_v40, %v1227_v41  ;;  %v1769_v40 = vrot.slane %v3963_v30, 1  ;;  %v1770_v41 = vrot.slane %v3964_v31, 1  ;;  %v5159_v30 = vld [vmem:[%s6155_s3 + $0x40] sm:$0xff]  }
  0x8a   : > { %v4003_v31 = vld [vmem:[%s6154_s2] ss:$0 sm:$0xff] }
  0x8b   : > { %4544 = vmatpush3.bf16.msra.mxu0 %v5112_v45  ;;  %v1222_v45 = vsel %vm659_vm0, %v1220_v35, %v1221_v36  ;;  %v5241_v35 = vld [vmem:[%s5316_s12 + $0x108] sm:$0xff]  ;;  %v1771_v47 = vsel %vm659_vm0, %v1769_v40, %v1770_v41 }
  0x8c   : > { %4545 = vmatprep.subr.bf16.mxu0 %v5113_v50  ;;  %v1580_v36 = vpack.c.bf16 %v5241_v35, %v5240_v34 }
  0x8e   : > { %4538 = vmatmul.mubr.bf16.gmra.mrb[4].mxu0 %v861_v53  ;;  %v1197_v53 = vld [vmem:[%s5316_s12 + $0x1f0] sm:$0x1] }
  0x8f   : > { %4546 = vmatpush3.bf16.msra.mxu0 %v5113_v50  ;;  %4557 = vmatprep.mubr.bf16.mxu0 %v1024_v55  ;;  %v1231_v50 = vsel %vm659_vm0, %v1229_v42, %v1230_v43  ;;  %v1232_v55 = vrot.slane %v1194_v48, 1  ;;  %v1772_v42 = vrot.slane %v3965_v32, 1  ;;  %v1773_v43 = vrot.slane %v3966_v33, 1  ;;  %v5243_v48 = vld [vmem:[%s5316_s12 + $0x1c8] sm:$0xff] }
  0x90   : > { %4547 = vmatprep.subr.bf16.mxu0 %v5114_v54 }
  0x93   : > { %4548 = vmatpush3.bf16.msra.mxu0 %v5114_v54  ;;  %v1247_v54 = vpack.c.bf16 %v1225_v46, %v1222_v45  ;;  %v5145_v45 = vld [vmem:[%s6153_s1 + $0x210] sm:$0xff]   ;;  %v1774_v46 = vsel %vm659_vm0, %v1772_v42, %v1773_v43 }
  0x94   : > { %4549 = vmatprep.subr.bf16.mxu0 %v5115_v56 }
  0x97   : > { %4550 = vmatpush3.bf16.msra.mxu0 %v5115_v56  ;;  %v1248_v56 = vpack.c.bf16 %v1231_v50, %v1228_v49  ;;  %v1801_v50 = vpack.c.bf16 %v1774_v46, %v1771_v47 }
  0x98   : > { %4551 = vmatprep.subr.bf16.mxu0 %v5116_v57 }
  0x9b   : > { %4552 = vmatpush3.bf16.msra.mxu0 %v5116_v57  ;;  %v1233_v57 = vrot.slane %v1195_v51, 1  ;;  %v5146_v51 = vld [vmem:[%s6153_s1 + $0x218] sm:$0xff]  }
  0x9c   : > { %4553 = vmatprep.subr.bf16.mxu0 %v5117_v58 }
  0x9d   : > { %v1234_v61 = vsel %vm659_vm0, %v1232_v55, %v1233_v57  ;;  %v3967_v55 = vld [vmem:[%s5316_s12 + $0xc0] sm:$0xfe] }
  0x9e   : > { %v3969_v57 = vld [vmem:[%s5316_s12 + $0x100] sm:$0xfe] }
  0x9f   : > { %4554 = vmatpush3.bf16.msra.mxu0 %v5117_v58  ;;  %v1235_v58 = vrot.slane %v1196_v52, 1  ;;  %v5147_v52 = vld [vmem:[%s6153_s1 + $0x220] sm:$0xff]   ;;  %v1778_v1 = vrot.slane %v3969_v57, 1 }
  0xa0   : > { %4555 = vmatprep.subr.bf16.mxu0 %v5118_v59 }
  0xa3   : > { %4556 = vmatpush3.bf16.msra.mxu0 %v5118_v59  ;;  %v1236_v59 = vrot.slane %v1197_v53, 1  ;;  %v5148_v53 = vld [vmem:[%s6153_s1 + $0x228] sm:$0xff]  }
  0xa4   : > { %4565 = vmatprep.subr.bf16.mxu0 %v5119_v60 }
  0xa5   : > { %v1237_v62 = vsel %vm659_vm0, %v1235_v58, %v1236_v59  ;;  %v3970_v58 = vld [vmem:[%s5316_s12 + $0x120] sm:$0x1]  ;;  %v3971_v59 = vld [vmem:[%s5316_s12 + $0x140] sm:$0xfe] }
  0xa6   : > { %4558 = vmatmul.mubr.bf16.vlgmr.msra.gmra.mrb[0].mxu0 %v1025_v5  ;;  %v1249_v0 = vpack.c.bf16 %v1237_v62, %v1234_v61  ;;  %v5131_v5 = vld [vmem:[%s6153_s1 + $0x1a0] sm:$0xff]   ;;  %v1779_v2 = vrot.slane %v3970_v58, 1 }
  0xa7   : > { %4566 = vmatpush3.bf16.msra.mxu0 %v5119_v60  ;;  %4561 = vmatprep.mubr.bf16.mxu0 %v1026_v6  ;;  %v5128_v60 = vld [vmem:[%s6153_s1 + $0x188] sm:$0xff]   ;;  %v3973_v61 = vld [vmem:[%s5316_s12 + $0x180] sm:$0xfe]  ;;  %v3974_v62 = vld [vmem:[%s5316_s12 + $0x1a0] sm:$0x1] }
  0xa8   : > { %4567 = vmatprep.subr.bf16.mxu0 %v5120_v7  ;;  %v5132_v6 = vld [vmem:[%s6153_s1 + $0x1a8] sm:$0xff]  }
  0xab   : > { %4568 = vmatpush3.bf16.msra.mxu0 %v5120_v7  ;;  %v5133_v7 = vld [vmem:[%s6153_s1 + $0x1b0] sm:$0xff]  }
  0xac   : > { %4569 = vmatprep.subr.bf16.mxu0 %v5121_v14 }
  0xae   : > { %4562 = vmatmul.mubr.bf16.gmra.mrb[4].mxu0 %v1027_v17  ;;  %v3906_v17 = vld [vmem:[%s5316_s12 + $0x200] sm:$0xff] }
  0xaf   : > { %4570 = vmatpush3.bf16.msra.mxu0 %v5121_v14  ;;  %4581 = vmatprep.mubr.bf16.mxu0 %v1246_v18  ;;  %v5236_v14 = vld [vmem:[%s5316_s12 + $0x180] sm:$0xff]  ;;  %v5137_v18 = vld [vmem:[%s6153_s1 + $0x1d0] sm:$0xff]  }
  0xb0   : > { %4571 = vmatprep.subr.bf16.mxu0 %v5122_v19  ;;  %v1415_v15 = vpack.c.bf16 %v5236_v14, %v5235_v13  ;;  %v3976_v13 = vld [vmem:[%s5316_s12 + $0x1e0] sm:$0x1]  ;;  %v3977_v14 = vld [vmem:[%s5316_s12 + $0x200] sm:$0xfe] }
  0xb3   : > { %4572 = vmatpush3.bf16.msra.mxu0 %v5122_v19  ;;  %v5237_v19 = vld [vmem:[%s5316_s12 + $0x1c0] sm:$0xff] }
  0xb4   : > { %4573 = vmatprep.subr.bf16.mxu0 %v5123_v22  ;;  %v1416_v20 = vpack.c.bf16 %v3906_v17, %v5237_v19  ;;  %v1787_v17 = vrot.slane %v3975_v10, 1  ;;  %v1788_v19 = vrot.slane %v3976_v13, 1 }
  0xb7   : > { %4574 = vmatpush3.bf16.msra.mxu0 %v5123_v22  ;;  %v5239_v22 = vld [vmem:[%s5316_s12 + $0x88] sm:$0xff] }
  0xb8   : > { %4575 = vmatprep.subr.bf16.mxu0 %v5124_v24  ;;  %v1579_v23 = vpack.c.bf16 %v5239_v22, %v5238_v21  ;;  %v1789_v22 = vsel %vm659_vm0, %v1787_v17, %v1788_v19 }
  0xbb   : > { %4576 = vmatpush3.bf16.msra.mxu0 %v5124_v24  ;;  %v5138_v24 = vld [vmem:[%s6153_s1 + $0x1d8] sm:$0xff]  }
  0xbc   : > { %4577 = vmatprep.subr.bf16.mxu0 %v5125_v26 }
  0xbf   : > { %4578 = vmatpush3.bf16.msra.mxu0 %v5125_v26  ;;  %v5140_v26 = vld [vmem:[%s6153_s1 + $0x1e8] sm:$0xff]  }
  0xc0   : > { %4579 = vmatprep.subr.bf16.mxu0 %v5126_v39 }
  0xc3   : > { %4580 = vmatpush3.bf16.msra.mxu0 %v5126_v39  ;;  %v5144_v39 = vld [vmem:[%s6153_s1 + $0x208] sm:$0xff]  }
  0xc4   : > { %4589 = vmatprep.subr.bf16.mxu0 %v5127_v44 }
  0xc6   : > { %4582 = vmatmul.mubr.bf16.vlgmr.msra.gmra.mrb[0].mxu0 %v1247_v54  ;;  %v5149_v54 = vld [vmem:[%s6153_s1 + $0x230] sm:$0xff]  }
  0xc7   : > { %4590 = vmatpush3.bf16.msra.mxu0 %v5127_v44  ;;  %4585 = vmatprep.mubr.bf16.mxu0 %v1248_v56  ;;  %v3938_v44 = vld [vmem:[%s5316_s12 + $0x208] sm:$0xff]  ;;  %v3968_v56 = vld [vmem:[%s5316_s12 + $0xe0] sm:$0x1] }
  0xc8   : > { %4591 = vmatprep.subr.bf16.mxu0 %v5128_v60  ;;  %v1582_v49 = vpack.c.bf16 %v3938_v44, %v5243_v48 }
  0xcb   : > { %4592 = vmatpush3.bf16.msra.mxu0 %v5128_v60  ;;  %v3972_v60 = vld [vmem:[%s5316_s12 + $0x160] sm:$0x1] }
  0xcc   : > { %4593 = vmatprep.subr.bf16.mxu0 %v5129_v63 }
  0xce   : > { %4586 = vmatmul.mubr.bf16.gmra.mrb[4].mxu0 %v1249_v0  ;;  %v1776_v0 = vrot.slane %v3968_v56, 1 }
  0xcf   : > { %4594 = vmatpush3.bf16.msra.mxu0 %v5129_v63  ;;  %4605 = vmatprep.mubr.bf16.mxu0 %v1413_v3  ;;  %v1775_v63 = vrot.slane %v3967_v55, 1  ;;  %v5150_v3 = vld [vmem:[%s6153_s1 + $0x238] sm:$0xff]  }
  0xd0   : > { %4595 = vmatprep.subr.bf16.mxu0 %v5130_v4 }
  0xd3   : > { %4596 = vmatpush3.bf16.msra.mxu0 %v5130_v4  ;;  %v1781_v4 = vrot.slane %v3971_v59, 1 }
  0xd4   : > { %4597 = vmatprep.subr.bf16.mxu0 %v5131_v5 }
  0xd7   : > { %4598 = vmatpush3.bf16.msra.mxu0 %v5131_v5  ;;  %v1782_v5 = vrot.slane %v3972_v60, 1 }
  0xd8   : > { %4599 = vmatprep.subr.bf16.mxu0 %v5132_v6 }
  0xd9   : > { %v1783_v11 = vsel %vm659_vm0, %v1781_v4, %v1782_v5 }
  0xdb   : > { %4600 = vmatpush3.bf16.msra.mxu0 %v5132_v6  ;;  %v1784_v6 = vrot.slane %v3973_v61, 1 }
  0xdc   : > { %4601 = vmatprep.subr.bf16.mxu0 %v5133_v7 }
  0xdf   : > { %4602 = vmatpush3.bf16.msra.mxu0 %v5133_v7  ;;  %v1785_v7 = vrot.slane %v3974_v62, 1 }
  0xe0   : > { %4603 = vmatprep.subr.bf16.mxu0 %v5134_v8 }
  0xe3   : > { %4604 = vmatpush3.bf16.msra.mxu0 %v5134_v8  ;;  %v1777_v8 = vsel %vm659_vm0, %v1775_v63, %v1776_v0 }
  0xe4   : > { %4613 = vmatprep.subr.bf16.mxu0 %v5135_v9 }
  0xe6   : > { %4606 = vmatmul.mubr.bf16.vlgmr.msra.gmra.mrb[0].mxu0 %v1414_v12  ;;  %v1786_v12 = vsel %vm659_vm0, %v1784_v6, %v1785_v7 }
  0xe7   : > { %4614 = vmatpush3.bf16.msra.mxu0 %v5135_v9  ;;  %4609 = vmatprep.mubr.bf16.mxu0 %v1415_v15  ;;  %v1780_v9 = vsel %vm659_vm0, %v1778_v1, %v1779_v2  ;;  %v3978_v15 = vld [vmem:[%s5316_s12 + $0x220] sm:$0x1] }
  0xe8   : > { %4615 = vmatprep.subr.bf16.mxu0 %v5136_v16  ;;  %v1791_v21 = vrot.slane %v3978_v15, 1 }
  0xeb   : > { %4616 = vmatpush3.bf16.msra.mxu0 %v5136_v16  ;;  %v1802_v16 = vpack.c.bf16 %v1780_v9, %v1777_v8  ;;  %v5160_v8 = vld [vmem:[%s6155_s3 + $0x48] sm:$0xff]  }
  0xec   : > { %4617 = vmatprep.subr.bf16.mxu0 %v5137_v18 }
  0xee   : > { %4610 = vmatmul.mubr.bf16.gmra.mrb[4].mxu0 %v1416_v20  ;;  %v1790_v20 = vrot.slane %v3977_v14, 1  ;;  %v5161_v14 = vld [vmem:[%s6155_s3 + $0x50] sm:$0xff]  }
  0xef   : > { %4618 = vmatpush3.bf16.msra.mxu0 %v5137_v18  ;;  %4629 = vmatprep.mubr.bf16.mxu0 %v1579_v23  ;;  %v1803_v18 = vpack.c.bf16 %v1786_v12, %v1783_v11 }
  0xf0   : > { %4619 = vmatprep.subr.bf16.mxu0 %v5138_v24  ;;  %v1792_v23 = vsel %vm659_vm0, %v1790_v20, %v1791_v21 }
  0xf3   : > { %4620 = vmatpush3.bf16.msra.mxu0 %v5138_v24  ;;  %v1804_v24 = vpack.c.bf16 %v1792_v23, %v1789_v22  ;;  %v5162_v22 = vld [vmem:[%s6155_s3 + $0x58] sm:$0xff]  }
  0xf4   : > { %4621 = vmatprep.subr.bf16.mxu0 %v5139_v25 }
  0xf7   : > { %4622 = vmatpush3.bf16.msra.mxu0 %v5139_v25  ;;  %v5252_v25 = vmov 0.0  }
  0xf8   : > { %4623 = vmatprep.subr.bf16.mxu0 %v5140_v26  ;;  %1988 = vst [vmem:[#allocation3 + $0x30] sm:$0xff] %v5252_v25  ;;  %1989 = vst [vmem:[#allocation3 + $0x38] sm:$0x3] %v5252_v25 }
  0xf9   : > { %1982 = vst [vmem:[#allocation3] sm:$0xff] %v5252_v25  ;;  %1983 = vst [vmem:[#allocation3 + $0x8] sm:$0x3] %v5252_v25 }
  0xfa   : > { %1984 = vst [vmem:[#allocation3 + $0x10] sm:$0xff] %v5252_v25  ;;  %1985 = vst [vmem:[#allocation3 + $0x18] sm:$0x3] %v5252_v25 }
  0xfb   : > { %4624 = vmatpush3.bf16.msra.mxu0 %v5140_v26  ;;  %1986 = vst [vmem:[#allocation3 + $0x20] sm:$0xff] %v5252_v25  ;;  %1987 = vst [vmem:[#allocation3 + $0x28] sm:$0x3] %v5252_v25  ;;  %v5155_v26 = vld [vmem:[%s6155_s3 + $0x20] sm:$0xff]  }
  0xfc   : > { %4625 = vmatprep.subr.bf16.mxu0 %v5141_v27  ;;  %1990 = vst [vmem:[#allocation3 + $0x40] sm:$0xff] %v5252_v25  ;;  %1991 = vst [vmem:[#allocation3 + $0x48] sm:$0x3] %v5252_v25  ;;  %4669 = vmatprep.subr.bf16.mxu1 %v5155_v26 }
  0xfd   : > { %1992 = vst [vmem:[#allocation3 + $0x50] sm:$0xff] %v5252_v25  ;;  %1993 = vst [vmem:[#allocation3 + $0x58] sm:$0x3] %v5252_v25  ;;  %4670 = vmatpush3.bf16.msra.mxu1 %v5155_v26 }
  0xfe   : > { %1994 = vst [vmem:[#allocation3 + $0x60] sm:$0xff] %v5252_v25  ;;  %1995 = vst [vmem:[#allocation3 + $0x68] sm:$0x3] %v5252_v25 }
  0xff   : > { %4626 = vmatpush3.bf16.msra.mxu0 %v5141_v27  ;;  %1996 = vst [vmem:[#allocation3 + $0x70] sm:$0xff] %v5252_v25  ;;  %1997 = vst [vmem:[#allocation3 + $0x78] sm:$0x3] %v5252_v25  ;;  %v5156_v27 = vld [vmem:[%s6155_s3 + $0x28] sm:$0xff]  }
 0x100   : > { %4627 = vmatprep.subr.bf16.mxu0 %v5142_v28  ;;  %1998 = vst [vmem:[#allocation3 + $0x80] sm:$0xff] %v5252_v25  ;;  %1999 = vst [vmem:[#allocation3 + $0x88] sm:$0x3] %v5252_v25  ;;  %4671 = vmatprep.subr.bf16.mxu1 %v5156_v27  ;;  %v2184_v17 = vld [vmem:[#allocation3 + $0x1] sm:$0xff] }
 0x101   : > { %2000 = vst [vmem:[#allocation3 + $0x90] sm:$0xff] %v5252_v25  ;;  %2001 = vst [vmem:[#allocation3 + $0x98] sm:$0x3] %v5252_v25  ;;  %4672 = vmatpush3.bf16.msra.mxu1 %v5156_v27 }
 0x103   : > { %4628 = vmatpush3.bf16.msra.mxu0 %v5142_v28  ;;  %v5157_v28 = vld [vmem:[%s6155_s3 + $0x30] sm:$0xff]  }
 0x104   : > { %4637 = vmatprep.subr.bf16.mxu0 %v5143_v29  ;;  %4673 = vmatprep.subr.bf16.mxu1 %v5157_v28 }
 0x105   : > { %4674 = vmatpush3.bf16.msra.mxu1 %v5157_v28  ;;  %v5163_v28 = vld [vmem:[%s6155_s3 + $0x60] sm:$0xff]  }
 0x106   : > { %4630 = vmatmul.mubr.bf16.vlgmr.msra.gmra.mrb[0].mxu0 %v1580_v36 }
 0x107   : > { %4638 = vmatpush3.bf16.msra.mxu0 %v5143_v29  ;;  %4633 = vmatprep.mubr.bf16.mxu0 %v1581_v38  ;;  %v5158_v29 = vld [vmem:[%s6155_s3 + $0x38] sm:$0xff]  }
 0x108   : > { %4639 = vmatprep.subr.bf16.mxu0 %v5144_v39  ;;  %4675 = vmatprep.subr.bf16.mxu1 %v5158_v29 }
 0x109   : > { %4676 = vmatpush3.bf16.msra.mxu1 %v5158_v29  ;;  %v5164_v29 = vld [vmem:[%s6155_s3 + $0x68] sm:$0xff]  }
 0x10a   : > { %4685 = vmatprep.subr.bf16.mxu1 %v5159_v30 }
 0x10b   : > { %4640 = vmatpush3.bf16.msra.mxu0 %v5144_v39 }
 0x10c   : > { %4641 = vmatprep.subr.bf16.mxu0 %v5145_v45 }
 0x10e   : > { %4634 = vmatmul.mubr.bf16.gmra.mrb[4].mxu0 %v1582_v49 }
 0x10f   : > { %4642 = vmatpush3.bf16.msra.mxu0 %v5145_v45  ;;  %4653 = vmatprep.mubr.bf16.mxu0 %v1801_v50 }
 0x110   : > { %4643 = vmatprep.subr.bf16.mxu0 %v5146_v51 }
 0x113   : > { %4644 = vmatpush3.bf16.msra.mxu0 %v5146_v51 }
 0x114   : > { %4645 = vmatprep.subr.bf16.mxu0 %v5147_v52 }
 0x117   : > { %4646 = vmatpush3.bf16.msra.mxu0 %v5147_v52 }
 0x118   : > { %4647 = vmatprep.subr.bf16.mxu0 %v5148_v53 }
 0x11b   : > { %4648 = vmatpush3.bf16.msra.mxu0 %v5148_v53 }
 0x11c   : > { %4649 = vmatprep.subr.bf16.mxu0 %v5149_v54 }
 0x11f   : > { %4650 = vmatpush3.bf16.msra.mxu0 %v5149_v54 }
 0x120   : > { %4651 = vmatprep.subr.bf16.mxu0 %v5150_v3 }
 0x123   : > { %4652 = vmatpush3.bf16.msra.mxu0 %v5150_v3 }
 0x126   : > { %4654 = vmatmul.mubr.bf16.vlgmr.msra.gmra.mrb[0].mxu0 %v1802_v16 }
 0x127   : > { %4657 = vmatprep.mubr.bf16.mxu0 %v1803_v18 }
 0x12e   : > { %4658 = vmatmul.mubr.bf16.gmra.mrb[4].mxu0 %v1804_v24 }
 0x1f9   : > { %v4655_v32 = vpop.f32.mrb[0].mxu0 }
 0x1fa   : > { %v1968_v33 = vadd.f32 %v4655_v32, %v4003_v31  ;;  %v1904_v34 = vpop.f32.mrb[1].mxu0  ;;  %v5167_v32 = vld [vmem:[%s6155_s3 + $0x80] sm:$0xff]  }
 0x1fb   : > { %v1966_v35 = vadd.f32 %v4003_v31, %v1904_v34  ;;  %v4656_v36 = vpop.f32.mrb[2].mxu0  ;;  %v5169_v34 = vld [vmem:[%s6155_s3 + $0x90] sm:$0xff]  }
 0x1fc   : > { %v5698_v37 = vmax.f32 %v1968_v33, 0.0  ;;  %v1969_v38 = vadd.f32 %v4656_v36, %v4003_v31  ;;  %v1907_v39 = vpop.f32.mrb[3].mxu0  ;;  %v5168_v33 = vld [vmem:[%s6155_s3 + $0x88] sm:$0xff]   ;;  %v5170_v36 = vld [vmem:[%s6155_s3 + $0x98] sm:$0xff]  }
 0x1fd   : > { %v5700_v40 = vmax.f32 %v1966_v35, 0.0  ;;  %v1967_v41 = vadd.f32 %v4003_v31, %v1907_v39  ;;  %v2350_v35 = vld [vmem:[#allocation3 + $0x2] sm:$0xff] }
 0x1fe   : > { %2005 = vst [vmem:[#allocation3 + $0x31] sm:$0xff] %v5698_v37  ;;  %v5703_v42 = vmax.f32 %v1969_v38, 0.0  ;;  %v5171_v39 = vld [vmem:[%s6155_s3 + $0xa0] sm:$0xff]  }
 0x1ff   : > { %2003 = vst [vmem:[#allocation3 + $0x11] sm:$0xff] %v5700_v40  ;;  %v5706_v43 = vmax.f32 %v1967_v41, 0.0  ;;  %v2200_v26 = vpack.c.bf16 %v5700_v40, %v2184_v17  ;;  %v5172_v41 = vld [vmem:[%s6155_s3 + $0xa8] sm:$0xff]  }
 0x200   : > { %2006 = vst [vmem:[#allocation3 + $0x41] sm:$0xff] %v5703_v42  ;;  %v2699_v44 = vpack.c.bf16 %v5703_v42, %v5698_v37  ;;  %v5180_v17 = vld [vmem:[%s6155_s3 + $0xe8] sm:$0xff]  }
 0x201   : > { %2004 = vst [vmem:[#allocation3 + $0x21] sm:$0xff] %v5706_v43  ;;  %v4659_v45 = vpop.f32.mrb[4].mxu0  ;;  %v5714_v47 = vpack.c.bf16 %v5698_v37, %v5706_v43  ;;  %v2698_v46 = vpack.c.bf16 %v5706_v43, %v5700_v40  ;;  %v5188_v40 = vld [vmem:[%s6155_s3 + $0x128] sm:$0xff]   ;;  %v5953_v43 = vld [vmem:[%s6157_s5 + $0x20] sm:$0xff]   ;;  %v5194_v37 = vld [vmem:[%s6155_s3 + $0x158] sm:$0xff]  }
 0x202   : > { %v1972_v48 = vadd.f32 %v4659_v45, %v4003_v31  ;;  %v1920_v49 = vpop.f32.mrb[5].mxu0  ;;  %v5173_v45 = vld [vmem:[%s6155_s3 + $0xb0] sm:$0xff]  }
 0x203   : > { %v1970_v50 = vadd.f32 %v4003_v31, %v1920_v49  ;;  %v4660_v51 = vpop.f32.mrb[6].mxu0  ;;  %v5175_v49 = vld [vmem:[%s6155_s3 + $0xc0] sm:$0xff]  }
 0x204   : > { %v5718_v52 = vmax.f32 %v1972_v48, 0.0  ;;  %v1973_v53 = vadd.f32 %v4660_v51, %v4003_v31  ;;  %v1923_v54 = vpop.f32.mrb[7].mxu0  ;;  %v5174_v48 = vld [vmem:[%s6155_s3 + $0xb8] sm:$0xff]   ;;  %v5176_v51 = vld [vmem:[%s6155_s3 + $0xc8] sm:$0xff]  }
 0x205   : > { %v5720_v55 = vmax.f32 %v1970_v50, 0.0  ;;  %v1971_v56 = vadd.f32 %v4003_v31, %v1923_v54  ;;  %v5727_v59 = vld [vmem:[#allocation3 + $0x30] sm:$0xff]  ;;  %v5166_v31 = vld [vmem:[%s6155_s3 + $0x78] sm:$0xff]  }
 0x206   : > { %2009 = vst [vmem:[#allocation3 + $0x71] sm:$0xff] %v5718_v52  ;;  %v5723_v57 = vmax.f32 %v1973_v53, 0.0  ;;  %v5725_v58 = vld [vmem:[#allocation3 + $0x10] sm:$0xff] }
 0x207   : > { %2007 = vst [vmem:[#allocation3 + $0x51] sm:$0xff] %v5720_v55  ;;  %v5730_v60 = vmax.f32 %v1971_v56, 0.0  ;;  %v2035_v61 = vpack.c.bf16 %v5725_v58, %v5252_v25  ;;  %v5734_v62 = vld [vmem:[#allocation3 + $0x40] sm:$0xff]  ;;  %v5738_v63 = vpack.c.bf16 %v5720_v55, %v5703_v42  ;;  %v5740_v0 = vld [vmem:[#allocation3 + $0x32] sm:$0xff] }
 0x208   : > { %v5742_v1 = vld [vmem:[#allocation3 + $0x42] sm:$0xff]  ;;  %2010 = vst [vmem:[#allocation3 + $0x81] sm:$0xff] %v5723_v57  ;;  %v2533_v4 = vpack.c.bf16 %v5734_v62, %v5727_v59  ;;  %v2701_v5 = vpack.c.bf16 %v5723_v57, %v5718_v52  ;;  %v5767_v10 = vld [vmem:[#allocation3 + $0x12] sm:$0xff] }
 0x209   : > { %v5745_v2 = vld [vmem:[#allocation3 + $0x20] sm:$0xff]  ;;  %v2865_v6 = vpack.c.bf16 %v5742_v1, %v5740_v0  ;;  %2008 = vst [vmem:[#allocation3 + $0x61] sm:$0xff] %v5730_v60  ;;  %4677 = vmatprep.mubr.bf16.mxu1 %v2035_v61  ;;  %v5765_v9 = vpack.c.bf16 %v5718_v52, %v5730_v60  ;;  %v2700_v12 = vpack.c.bf16 %v5730_v60, %v5720_v55  ;;  %v5177_v54 = vld [vmem:[%s6155_s3 + $0xd0] sm:$0xff]   ;;  %v5198_v55 = vld [vmem:[%s6155_s3 + $0x178] sm:$0xff]  }
 0x20a   : > { %v5747_v3 = vld [vmem:[#allocation3 + $0x22] sm:$0xff]  ;;  %v5758_v7 = vpack.c.bf16 %v5727_v59, %v5745_v2  ;;  %v2532_v11 = vpack.c.bf16 %v5745_v2, %v5725_v58  ;;  %v2366_v38 = vpack.c.bf16 %v5767_v10, %v2350_v35  ;;  %v5182_v58 = vld [vmem:[%s6155_s3 + $0xf8] sm:$0xff]   ;;  %v5197_v52 = vld [vmem:[%s6155_s3 + $0x170] sm:$0xff]  }
 0x20b   : > { %v2864_v13 = vpack.c.bf16 %v5747_v3, %v5767_v10  ;;  %v5852_v50 = vpack.c.bf16 %v5740_v0, %v5747_v3  ;;  %v5183_v2 = vld [vmem:[%s6155_s3 + $0x100] sm:$0xff]   ;;  %v5918_v59 = vld [vmem:[%s6157_s5 + $0x8] sm:$0xff]   ;;  %v3536_v35 = vld [vmem:[%s5316_s12 + $0x18] sm:$0xff] }
 0x20c   : > { %4678 = vmatmul.mubr.bf16.vlgmr.msra.gmra.mrb[0].mxu1 %v5758_v7  ;;  %v5195_v42 = vld [vmem:[%s6155_s3 + $0x160] sm:$0xff]   ;;  %v5200_v3 = vld [vmem:[%s6155_s3 + $0x188] sm:$0xff]   ;;  %v5202_v0 = vld [vmem:[%s6155_s3 + $0x198] sm:$0xff]  }
 0x20d   : > { %4686 = vmatpush3.bf16.msra.mxu1 %v5159_v30  ;;  %v5787_v19 = vld [vmem:[#allocation3 + $0x70] sm:$0xff]  ;;  %v5199_v60 = vld [vmem:[%s6155_s3 + $0x180] sm:$0xff]  }
 0x20e   : > { %4687 = vmatprep.subr.bf16.mxu1 %v5160_v8  ;;  %v5779_v15 = vld [vmem:[#allocation3 + $0x50] sm:$0xff] }
 0x20f   : > { %v5783_v16 = vpack.c.bf16 %v5779_v15, %v5734_v62  ;;  %v5799_v23 = vld [vmem:[#allocation3 + $0x52] sm:$0xff]  ;;  %v6039_v10 = vld [vmem:[#allocation3 + $0x82] sm:$0xff] }
 0x210   : > { %v5785_v18 = vld [vmem:[#allocation3 + $0x60] sm:$0xff]  ;;  %v5165_v30 = vld [vmem:[%s6155_s3 + $0x70] sm:$0xff]   ;;  %v5859_v53 = vpack.c.bf16 %v5799_v23, %v5742_v1 }
 0x211   : > { %4688 = vmatpush3.bf16.msra.mxu1 %v5160_v8  ;;  %v5789_v20 = vld [vmem:[#allocation3 + $0x62] sm:$0xff]  ;;  %4681 = vmatprep.mubr.bf16.mxu1 %v5783_v16  ;;  %v5794_v21 = vpack.c.bf16 %v5787_v19, %v5785_v18  ;;  %v2534_v24 = vpack.c.bf16 %v5785_v18, %v5779_v15  ;;  %v5866_v56 = vld [vmem:[#allocation3 + $0x72] sm:$0xff] }
 0x212   : > { %4689 = vmatprep.subr.bf16.mxu1 %v5161_v14  ;;  %v2866_v27 = vpack.c.bf16 %v5789_v20, %v5799_v23  ;;  %v5870_v61 = vpack.c.bf16 %v5866_v56, %v5789_v20  ;;  %v5178_v8 = vld [vmem:[%s6155_s3 + $0xd8] sm:$0xff]   ;;  %v5930_v15 = vld [vmem:[%s6157_s5 + $0x10] sm:$0xff]   ;;  %v5187_v18 = vld [vmem:[%s6155_s3 + $0x120] sm:$0xff]  }
 0x213   : > { %v5203_v1 = vld [vmem:[%s6155_s3 + $0x1a0] sm:$0xff]   ;;  %v5208_v23 = vld [vmem:[%s6155_s3 + $0x1c8] sm:$0xff]  }
 0x214   : > { %4682 = vmatmul.mubr.bf16.gmra.mrb[4].mxu1 %v5794_v21  ;;  %v5207_v20 = vld [vmem:[%s6155_s3 + $0x1c0] sm:$0xff]  }
 0x215   : > { %4690 = vmatpush3.bf16.msra.mxu1 %v5161_v14  ;;  %4701 = vmatprep.mubr.bf16.mxu1 %v2200_v26  ;;  %v5179_v14 = vld [vmem:[%s6155_s3 + $0xe0] sm:$0xff]  }
 0x216   : > { %4691 = vmatprep.subr.bf16.mxu1 %v5162_v22  ;;  %v5903_v26 = vld [vmem:[%s6157_s5] sm:$0xff]  }
 0x217   : > { %4877 = vmatprep.subr.bf16.mxu0 %v5903_v26 }
 0x218   : > { %4878 = vmatpush3.bf16.msra.mxu0 %v5903_v26 }
 0x219   : > { %4692 = vmatpush3.bf16.msra.mxu1 %v5162_v22  ;;  %v5181_v22 = vld [vmem:[%s6155_s3 + $0xf0] sm:$0xff]   ;;  %4879 = vmatprep.subr.bf16.mxu0 %v5918_v59 }
 0x21a   : > { %4693 = vmatprep.subr.bf16.mxu1 %v5163_v28 }
 0x21c   : > { %4880 = vmatpush3.bf16.msra.mxu0 %v5918_v59 }
 0x21d   : > { %4694 = vmatpush3.bf16.msra.mxu1 %v5163_v28  ;;  %v5185_v28 = vld [vmem:[%s6155_s3 + $0x110] sm:$0xff]   ;;  %4881 = vmatprep.subr.bf16.mxu0 %v5930_v15 }
 0x21e   : > { %4695 = vmatprep.subr.bf16.mxu1 %v5164_v29 }
 0x220   : > { %4882 = vmatpush3.bf16.msra.mxu0 %v5930_v15 }
 0x221   : > { %4696 = vmatpush3.bf16.msra.mxu1 %v5164_v29  ;;  %v5912_v29 = vld [vmem:[#allocation3 + $0x80] sm:$0xff] }
 0x222   : > { %4697 = vmatprep.subr.bf16.mxu1 %v5165_v30  ;;  %v2535_v62 = vpack.c.bf16 %v5912_v29, %v5787_v19  ;;  %v5943_v19 = vld [vmem:[%s6157_s5 + $0x18] sm:$0xff]  }
 0x223   : > { %4883 = vmatprep.subr.bf16.mxu0 %v5943_v19 }
 0x224   : > { %4884 = vmatpush3.bf16.msra.mxu0 %v5943_v19 }
 0x225   : > { %4698 = vmatpush3.bf16.msra.mxu1 %v5165_v30  ;;  %4885 = vmatprep.subr.bf16.mxu0 %v5953_v43  ;;  %v5190_v30 = vld [vmem:[%s6155_s3 + $0x138] sm:$0xff]  }
 0x226   : > { %4699 = vmatprep.subr.bf16.mxu1 %v5166_v31 }
 0x228   : > { %4886 = vmatpush3.bf16.msra.mxu0 %v5953_v43 }
 0x229   : > { %4700 = vmatpush3.bf16.msra.mxu1 %v5166_v31  ;;  %v5973_v31 = vld [vmem:[%s6157_s5 + $0x30] sm:$0xff]  }
 0x22a   : > { %4709 = vmatprep.subr.bf16.mxu1 %v5167_v32 }
 0x22c   : > { %4702 = vmatmul.mubr.bf16.vlgmr.msra.gmra.mrb[0].mxu1 %v5714_v47 }
 0x22d   : > { %4705 = vmatprep.mubr.bf16.mxu1 %v5738_v63  ;;  %4710 = vmatpush3.bf16.msra.mxu1 %v5167_v32  ;;  %v5191_v32 = vld [vmem:[%s6155_s3 + $0x140] sm:$0xff]  }
 0x22e   : > { %4711 = vmatprep.subr.bf16.mxu1 %v5168_v33 }
 0x231   : > { %4712 = vmatpush3.bf16.msra.mxu1 %v5168_v33  ;;  %v5983_v33 = vld [vmem:[%s6157_s5 + $0x38] sm:$0xff]  }
 0x232   : > { %4713 = vmatprep.subr.bf16.mxu1 %v5169_v34 }
 0x234   : > { %4706 = vmatmul.mubr.bf16.gmra.mrb[4].mxu1 %v5765_v9 }
 0x235   : > { %4714 = vmatpush3.bf16.msra.mxu1 %v5169_v34  ;;  %4725 = vmatprep.mubr.bf16.mxu1 %v2366_v38  ;;  %v5192_v34 = vld [vmem:[%s6155_s3 + $0x148] sm:$0xff]  }
 0x236   : > { %4715 = vmatprep.subr.bf16.mxu1 %v5170_v36 }
 0x239   : > { %4716 = vmatpush3.bf16.msra.mxu1 %v5170_v36  ;;  %v3537_v36 = vld [vmem:[%s5316_s12 + $0x58] sm:$0xff] }
 0x23a   : > { %4717 = vmatprep.subr.bf16.mxu1 %v5171_v39  ;;  %v3544_v38 = vpack.c.bf16 %v3537_v36, %v3536_v35 }
 0x23c   : > { %4893 = vmatprep.mubr.bf16.mxu0 %v3544_v38 }
 0x23d   : > { %4718 = vmatpush3.bf16.msra.mxu1 %v5171_v39  ;;  %v3538_v39 = vld [vmem:[%s5316_s12 + $0x98] sm:$0xff] }
 0x23e   : > { %4719 = vmatprep.subr.bf16.mxu1 %v5172_v41 }
 0x241   : > { %4720 = vmatpush3.bf16.msra.mxu1 %v5172_v41  ;;  %v3539_v41 = vld [vmem:[%s5316_s12 + $0xd8] sm:$0xff] }
 0x242   : > { %4721 = vmatprep.subr.bf16.mxu1 %v5173_v45 }
 0x245   : > { %4722 = vmatpush3.bf16.msra.mxu1 %v5173_v45  ;;  %v3545_v45 = vpack.c.bf16 %v3539_v41, %v3538_v39 }
 0x246   : > { %4723 = vmatprep.subr.bf16.mxu1 %v5174_v48 }
 0x249   : > { %4724 = vmatpush3.bf16.msra.mxu1 %v5174_v48  ;;  %v5193_v48 = vld [vmem:[%s6155_s3 + $0x150] sm:$0xff]  }
 0x24a   : > { %4733 = vmatprep.subr.bf16.mxu1 %v5175_v49 }
 0x24c   : > { %4726 = vmatmul.mubr.bf16.vlgmr.msra.gmra.mrb[0].mxu1 %v5852_v50 }
 0x24d   : > { %4729 = vmatprep.mubr.bf16.mxu1 %v5859_v53  ;;  %4734 = vmatpush3.bf16.msra.mxu1 %v5175_v49  ;;  %v3034_v49 = vpack.c.bf16 %v5252_v25, %v5912_v29  ;;  %v5212_v25 = vld [vmem:[%s6155_s3 + $0x1e8] sm:$0xff]  }
 0x24e   : > { %4735 = vmatprep.subr.bf16.mxu1 %v5176_v51 }
 0x251   : > { %4736 = vmatpush3.bf16.msra.mxu1 %v5176_v51  ;;  %v5210_v51 = vld [vmem:[%s6155_s3 + $0x1d8] sm:$0xff]  }
 0x252   : > { %4737 = vmatprep.subr.bf16.mxu1 %v5177_v54 }
 0x254   : > { %4730 = vmatmul.mubr.bf16.gmra.mrb[4].mxu1 %v5870_v61 }
 0x255   : > { %4738 = vmatpush3.bf16.msra.mxu1 %v5177_v54  ;;  %4749 = vmatprep.mubr.bf16.mxu1 %v2532_v11  ;;  %v5184_v11 = vld [vmem:[%s6155_s3 + $0x108] sm:$0xff]   ;;  %v5215_v54 = vld [vmem:[%s6155_s3 + $0x200] sm:$0xff]  }
 0x256   : > { %4739 = vmatprep.subr.bf16.mxu1 %v5178_v8 }
 0x259   : > { %4740 = vmatpush3.bf16.msra.mxu1 %v5178_v8  ;;  %v5219_v8 = vld [vmem:[%s6155_s3 + $0x210] sm:$0xff]  }
 0x25a   : > { %4741 = vmatprep.subr.bf16.mxu1 %v5179_v14 }
 0x25d   : > { %4742 = vmatpush3.bf16.msra.mxu1 %v5179_v14  ;;  %v3188_v14 = vld [vmem:[#allocation3 + $0x91] sm:$0xff] }
 0x25e   : > { %4743 = vmatprep.subr.bf16.mxu1 %v5180_v17 }
 0x261   : > { %4744 = vmatpush3.bf16.msra.mxu1 %v5180_v17  ;;  %v3200_v17 = vpack.c.bf16 %v3188_v14, %v5723_v57  ;;  %v5225_v57 = vld [vmem:[%s6155_s3 + $0x228] sm:$0xff]  }
 0x262   : > { %4745 = vmatprep.subr.bf16.mxu1 %v5181_v22 }
 0x265   : > { %4746 = vmatpush3.bf16.msra.mxu1 %v5181_v22  ;;  %v5221_v22 = vld [vmem:[%s6155_s3 + $0x218] sm:$0xff]  }
 0x266   : > { %4747 = vmatprep.subr.bf16.mxu1 %v5182_v58 }
 0x269   : > { %4748 = vmatpush3.bf16.msra.mxu1 %v5182_v58  ;;  %v3540_v58 = vld [vmem:[%s5316_s12 + $0x118] sm:$0xff] }
 0x26a   : > { %4757 = vmatprep.subr.bf16.mxu1 %v5183_v2 }
 0x26c   : > { %4750 = vmatmul.mubr.bf16.vlgmr.msra.gmra.mrb[0].mxu1 %v2533_v4  ;;  %v5186_v4 = vld [vmem:[%s6155_s3 + $0x118] sm:$0xff]  }
 0x26d   : > { %4753 = vmatprep.mubr.bf16.mxu1 %v2534_v24  ;;  %4758 = vmatpush3.bf16.msra.mxu1 %v5183_v2  ;;  %v5963_v24 = vld [vmem:[%s6157_s5 + $0x28] sm:$0xff]   ;;  %v3541_v2 = vld [vmem:[%s5316_s12 + $0x158] sm:$0xff] }
 0x26e   : > { %4759 = vmatprep.subr.bf16.mxu1 %v5184_v11  ;;  %4887 = vmatprep.subr.bf16.mxu0 %v5963_v24 }
 0x26f   : > { %4888 = vmatpush3.bf16.msra.mxu0 %v5963_v24 }
 0x270   : > { %4889 = vmatprep.subr.bf16.mxu0 %v5973_v31 }
 0x271   : > { %4760 = vmatpush3.bf16.msra.mxu1 %v5184_v11  ;;  %v3354_v11 = vld [vmem:[#allocation3 + $0x92] sm:$0xff] }
 0x272   : > { %4761 = vmatprep.subr.bf16.mxu1 %v5185_v28  ;;  %v3366_v29 = vpack.c.bf16 %v3354_v11, %v6039_v10 }
 0x273   : > { %4890 = vmatpush3.bf16.msra.mxu0 %v5973_v31 }
 0x274   : > { %4754 = vmatmul.mubr.bf16.gmra.mrb[4].mxu1 %v2535_v62  ;;  %4891 = vmatprep.subr.bf16.mxu0 %v5983_v33 }
 0x275   : > { %4762 = vmatpush3.bf16.msra.mxu1 %v5185_v28  ;;  %4773 = vmatprep.mubr.bf16.mxu1 %v2698_v46  ;;  %v5189_v46 = vld [vmem:[%s6155_s3 + $0x130] sm:$0xff]   ;;  %v3546_v28 = vpack.c.bf16 %v3541_v2, %v3540_v58 }
 0x276   : > { %4763 = vmatprep.subr.bf16.mxu1 %v5186_v4 }
 0x277   : > { %4892 = vmatpush3.bf16.msra.mxu0 %v5983_v33 }
 0x279   : > { %4764 = vmatpush3.bf16.msra.mxu1 %v5186_v4 }
 0x27a   : > { %4765 = vmatprep.subr.bf16.mxu1 %v5187_v18  ;;  %4894 = vmatmul.mubr.bf16.vlgmr.msra.gmra.mrb[8].mxu0 %v3545_v45 }
 0x27d   : > { %4766 = vmatpush3.bf16.msra.mxu1 %v5187_v18  ;;  %v4204_v18 = vld [vmem:[%s6156_s4] ss:$0 sm:$0xff] }
 0x27e   : > { %4767 = vmatprep.subr.bf16.mxu1 %v5188_v40 }
 0x281   : > { %4768 = vmatpush3.bf16.msra.mxu1 %v5188_v40 }
 0x282   : > { %4769 = vmatprep.subr.bf16.mxu1 %v5189_v46 }
 0x285   : > { %4770 = vmatpush3.bf16.msra.mxu1 %v5189_v46 }
 0x286   : > { %4771 = vmatprep.subr.bf16.mxu1 %v5190_v30 }
 0x289   : > { %4772 = vmatpush3.bf16.msra.mxu1 %v5190_v30  ;;  %v4205_v30 = vld [vmem:[%s6158_s6] ss:$0 sm:$0xff] }
 0x28a   : > { %4781 = vmatprep.subr.bf16.mxu1 %v5191_v32 }
 0x28c   : > { %4774 = vmatmul.mubr.bf16.vlgmr.msra.gmra.mrb[0].mxu1 %v2699_v44  ;;  %v5196_v44 = vld [vmem:[%s6155_s3 + $0x168] sm:$0xff]  }
 0x28d   : > { %4777 = vmatprep.mubr.bf16.mxu1 %v2700_v12  ;;  %4782 = vmatpush3.bf16.msra.mxu1 %v5191_v32  ;;  %v2867_v12 = vpack.c.bf16 %v6039_v10, %v5866_v56  ;;  %v5217_v56 = vld [vmem:[%s6155_s3 + $0x208] sm:$0xff]  }
 0x28e   : > { %4783 = vmatprep.subr.bf16.mxu1 %v5192_v34 }
 0x291   : > { %4784 = vmatpush3.bf16.msra.mxu1 %v5192_v34 }
 0x292   : > { %4785 = vmatprep.subr.bf16.mxu1 %v5193_v48 }
 0x294   : > { %4778 = vmatmul.mubr.bf16.gmra.mrb[4].mxu1 %v2701_v5  ;;  %v5201_v5 = vld [vmem:[%s6155_s3 + $0x190] sm:$0xff]  }
 0x295   : > { %4786 = vmatpush3.bf16.msra.mxu1 %v5193_v48  ;;  %4797 = vmatprep.mubr.bf16.mxu1 %v2864_v13  ;;  %v5205_v13 = vld [vmem:[%s6155_s3 + $0x1b0] sm:$0xff]  }
 0x296   : > { %4787 = vmatprep.subr.bf16.mxu1 %v5194_v37 }
 0x299   : > { %4788 = vmatpush3.bf16.msra.mxu1 %v5194_v37 }
 0x29a   : > { %4789 = vmatprep.subr.bf16.mxu1 %v5195_v42 }
 0x29d   : > { %4790 = vmatpush3.bf16.msra.mxu1 %v5195_v42 }
 0x29e   : > { %4791 = vmatprep.subr.bf16.mxu1 %v5196_v44 }
 0x2a1   : > { %4792 = vmatpush3.bf16.msra.mxu1 %v5196_v44 }
 0x2a2   : > { %4793 = vmatprep.subr.bf16.mxu1 %v5197_v52 }
 0x2a5   : > { %4794 = vmatpush3.bf16.msra.mxu1 %v5197_v52 }
 0x2a6   : > { %4795 = vmatprep.subr.bf16.mxu1 %v5198_v55 }
 0x2a9   : > { %4796 = vmatpush3.bf16.msra.mxu1 %v5198_v55  ;;  %v4931_v55 = vadd.f32 %v4205_v30, %v4204_v18 }
 0x2aa   : > { %4805 = vmatprep.subr.bf16.mxu1 %v5199_v60 }
 0x2ac   : > { %4798 = vmatmul.mubr.bf16.vlgmr.msra.gmra.mrb[0].mxu1 %v2865_v6  ;;  %v5204_v6 = vld [vmem:[%s6155_s3 + $0x1a8] sm:$0xff]  }
 0x2ad   : > { %4801 = vmatprep.mubr.bf16.mxu1 %v2866_v27  ;;  %4806 = vmatpush3.bf16.msra.mxu1 %v5199_v60  ;;  %v5209_v27 = vld [vmem:[%s6155_s3 + $0x1d0] sm:$0xff]  }
 0x2ae   : > { %4807 = vmatprep.subr.bf16.mxu1 %v5200_v3 }
 0x2b1   : > { %4808 = vmatpush3.bf16.msra.mxu1 %v5200_v3 }
 0x2b2   : > { %4809 = vmatprep.subr.bf16.mxu1 %v5201_v5 }
 0x2b4   : > { %4802 = vmatmul.mubr.bf16.gmra.mrb[4].mxu1 %v2867_v12 }
 0x2b5   : > { %4810 = vmatpush3.bf16.msra.mxu1 %v5201_v5  ;;  %4821 = vmatprep.mubr.bf16.mxu1 %v5758_v7  ;;  %v5206_v7 = vld [vmem:[%s6155_s3 + $0x1b8] sm:$0xff]  }
 0x2b6   : > { %4811 = vmatprep.subr.bf16.mxu1 %v5202_v0 }
 0x2b9   : > { %4812 = vmatpush3.bf16.msra.mxu1 %v5202_v0 }
 0x2ba   : > { %4813 = vmatprep.subr.bf16.mxu1 %v5203_v1 }
 0x2bd   : > { %4814 = vmatpush3.bf16.msra.mxu1 %v5203_v1 }
 0x2be   : > { %4815 = vmatprep.subr.bf16.mxu1 %v5204_v6 }
 0x2c1   : > { %4816 = vmatpush3.bf16.msra.mxu1 %v5204_v6 }
 0x2c2   : > { %4817 = vmatprep.subr.bf16.mxu1 %v5205_v13 }
 0x2c5   : > { %4818 = vmatpush3.bf16.msra.mxu1 %v5205_v13 }
 0x2c6   : > { %4819 = vmatprep.subr.bf16.mxu1 %v5206_v7 }
 0x2c9   : > { %4820 = vmatpush3.bf16.msra.mxu1 %v5206_v7 }
 0x2ca   : > { %4829 = vmatprep.subr.bf16.mxu1 %v5207_v20 }
 0x2cc   : > { %4822 = vmatmul.mubr.bf16.vlgmr.msra.gmra.mrb[0].mxu1 %v5783_v16  ;;  %v5211_v16 = vld [vmem:[%s6155_s3 + $0x1e0] sm:$0xff]  }
 0x2cd   : > { %4825 = vmatprep.mubr.bf16.mxu1 %v5794_v21  ;;  %4830 = vmatpush3.bf16.msra.mxu1 %v5207_v20  ;;  %v5213_v21 = vld [vmem:[%s6155_s3 + $0x1f0] sm:$0xff]  }
 0x2ce   : > { %4831 = vmatprep.subr.bf16.mxu1 %v5208_v23 }
 0x2d1   : > { %4832 = vmatpush3.bf16.msra.mxu1 %v5208_v23 }
 0x2d2   : > { %4833 = vmatprep.subr.bf16.mxu1 %v5209_v27 }
 0x2d4   : > { %4826 = vmatmul.mubr.bf16.gmra.mrb[4].mxu1 %v3034_v49 }
 0x2d5   : > { %4834 = vmatpush3.bf16.msra.mxu1 %v5209_v27  ;;  %4845 = vmatprep.mubr.bf16.mxu1 %v5714_v47  ;;  %v5214_v47 = vld [vmem:[%s6155_s3 + $0x1f8] sm:$0xff]  }
 0x2d6   : > { %4835 = vmatprep.subr.bf16.mxu1 %v5210_v51 }
 0x2d9   : > { %4836 = vmatpush3.bf16.msra.mxu1 %v5210_v51 }
 0x2da   : > { %4837 = vmatprep.subr.bf16.mxu1 %v5211_v16 }
 0x2dd   : > { %4838 = vmatpush3.bf16.msra.mxu1 %v5211_v16 }
 0x2de   : > { %4839 = vmatprep.subr.bf16.mxu1 %v5212_v25 }
 0x2e1   : > { %4840 = vmatpush3.bf16.msra.mxu1 %v5212_v25 }
 0x2e2   : > { %4841 = vmatprep.subr.bf16.mxu1 %v5213_v21 }
 0x2e5   : > { %4842 = vmatpush3.bf16.msra.mxu1 %v5213_v21 }
 0x2e6   : > { %4843 = vmatprep.subr.bf16.mxu1 %v5214_v47 }
 0x2e9   : > { %4844 = vmatpush3.bf16.msra.mxu1 %v5214_v47 }
 0x2ea   : > { %4853 = vmatprep.subr.bf16.mxu1 %v5215_v54 }
 0x2ec   : > { %4846 = vmatmul.mubr.bf16.vlgmr.msra.gmra.mrb[0].mxu1 %v5738_v63  ;;  %v5223_v63 = vld [vmem:[%s6155_s3 + $0x220] sm:$0xff]  }
 0x2ed   : > { %4849 = vmatprep.mubr.bf16.mxu1 %v5765_v9  ;;  %4854 = vmatpush3.bf16.msra.mxu1 %v5215_v54  ;;  %v5227_v9 = vld [vmem:[%s6155_s3 + $0x230] sm:$0xff]  }
 0x2ee   : > { %4855 = vmatprep.subr.bf16.mxu1 %v5217_v56 }
 0x2f1   : > { %4856 = vmatpush3.bf16.msra.mxu1 %v5217_v56 }
 0x2f2   : > { %4857 = vmatprep.subr.bf16.mxu1 %v5219_v8 }
 0x2f4   : > { %4850 = vmatmul.mubr.bf16.gmra.mrb[4].mxu1 %v3200_v17 }
 0x2f5   : > { %4858 = vmatpush3.bf16.msra.mxu1 %v5219_v8  ;;  %4869 = vmatprep.mubr.bf16.mxu1 %v5852_v50  ;;  %v5229_v50 = vld [vmem:[%s6155_s3 + $0x238] sm:$0xff]  }
 0x2f6   : > { %4859 = vmatprep.subr.bf16.mxu1 %v5221_v22 }
 0x2f9   : > { %4860 = vmatpush3.bf16.msra.mxu1 %v5221_v22 }
 0x2fa   : > { %4861 = vmatprep.subr.bf16.mxu1 %v5223_v63 }
 0x2fd   : > { %4862 = vmatpush3.bf16.msra.mxu1 %v5223_v63 }
 0x2fe   : > { %4863 = vmatprep.subr.bf16.mxu1 %v5225_v57 }
 0x301   : > { %4864 = vmatpush3.bf16.msra.mxu1 %v5225_v57 }
 0x302   : > { %4865 = vmatprep.subr.bf16.mxu1 %v5227_v9 }
 0x305   : > { %4866 = vmatpush3.bf16.msra.mxu1 %v5227_v9 }
 0x306   : > { %4867 = vmatprep.subr.bf16.mxu1 %v5229_v50 }
 0x309   : > { %4868 = vmatpush3.bf16.msra.mxu1 %v5229_v50 }
 0x30a   : > { %4901 = vmatprep.subr.bf16.mxu1 %v5903_v26 }
 0x30c   : > { %4870 = vmatmul.mubr.bf16.vlgmr.msra.gmra.mrb[0].mxu1 %v5859_v53  ;;  %v3542_v53 = vld [vmem:[%s5316_s12 + $0x198] sm:$0xff] }
 0x30d   : > { %4873 = vmatprep.mubr.bf16.mxu1 %v5870_v61  ;;  %4909 = vmatpush3.bf16.msra.mxu1 %v5903_v26  ;;  %v3543_v61 = vld [vmem:[%s5316_s12 + $0x1d8] sm:$0xff] }
 0x30e   : > { %4902 = vmatprep.subr.bf16.mxu1 %v5918_v59  ;;  %v3547_v26 = vpack.c.bf16 %v3543_v61, %v3542_v53 }
 0x311   : > { %4910 = vmatpush3.bf16.msra.mxu1 %v5918_v59 }
 0x312   : > { %4903 = vmatprep.subr.bf16.mxu1 %v5930_v15 }
 0x314   : > { %4874 = vmatmul.mubr.bf16.gmra.mrb[4].mxu1 %v3366_v29 }
 0x315   : > { %4911 = vmatpush3.bf16.msra.mxu1 %v5930_v15  ;;  %4897 = vmatprep.mubr.bf16.mxu1 %v3546_v28 }
 0x316   : > { %4904 = vmatprep.subr.bf16.mxu1 %v5943_v19 }
 0x319   : > { %4912 = vmatpush3.bf16.msra.mxu1 %v5943_v19 }
 0x31a   : > { %4905 = vmatprep.subr.bf16.mxu1 %v5953_v43 }
 0x31d   : > { %4913 = vmatpush3.bf16.msra.mxu1 %v5953_v43 }
 0x31e   : > { %4906 = vmatprep.subr.bf16.mxu1 %v5963_v24 }
 0x321   : > { %4914 = vmatpush3.bf16.msra.mxu1 %v5963_v24 }
 0x322   : > { %4907 = vmatprep.subr.bf16.mxu1 %v5973_v31 }
 0x325   : > { %4915 = vmatpush3.bf16.msra.mxu1 %v5973_v31 }
 0x326   : > { %4908 = vmatprep.subr.bf16.mxu1 %v5983_v33 }
 0x329   : > { %4916 = vmatpush3.bf16.msra.mxu1 %v5983_v33 }
 0x32c   : > { %4898 = vmatmul.mubr.bf16.vlgmr.msra.gmra.mrb[4].mxu1 %v3547_v26 }
 0x34d   : > { %v4895_v59 = vpop.f32.mrb[8].mxu0 }
 0x34e   : > { %v3653_v62 = vpop.f32.mrb[9].mxu0 }
 0x34f   : > { %v4896_v4 = vpop.f32.mrb[10].mxu0 }
 0x350   : > { %v3656_v15 = vpop.f32.mrb[11].mxu0 }
 0x3df   : > { %v4871_v19 = vpop.f32.mrb[0].mxu1 }
 0x3e0   : > { %v4917_v40 = vadd.f32 %v4871_v19, %v4204_v18  ;;  %v3466_v43 = vpop.f32.mrb[1].mxu1 }
 0x3e1   : > { %v4920_v46 = vadd.f32 %v4204_v18, %v3466_v43  ;;  %v4872_v24 = vpop.f32.mrb[2].mxu1 }
 0x3e2   : > { %v4923_v31 = vadd.f32 %v4872_v24, %v4204_v18  ;;  %v4918_v32 = vadd.f32 %v4917_v40, %v4895_v59  ;;  %v3469_v33 = vpop.f32.mrb[3].mxu1 }
 0x3e3   : > { %v4926_v34 = vadd.f32 %v4204_v18, %v3469_v33  ;;  %v4921_v35 = vadd.f32 %v4920_v46, %v3653_v62 }
 0x3e4   : > { %v4919_v36 = vadd.f32 %v4918_v32, %v4205_v30  ;;  %v4924_v38 = vadd.f32 %v4923_v31, %v4205_v30 }
 0x3e5   : > { %v4922_v39 = vadd.f32 %v4921_v35, %v4205_v30  ;;  %v4927_v41 = vadd.f32 %v4926_v34, %v4205_v30 }
 0x3e6   : > { %v3694_v45 = vmax.f32 %v4919_v36, 0.0  ;;  %v4925_v48 = vadd.f32 %v4924_v38, %v4896_v4 }
 0x3e7   : > { %v3692_v37 = vmax.f32 %v4922_v39, 0.0  ;;  %v4928_v42 = vadd.f32 %v4927_v41, %v3656_v15 }
 0x3e8   : > { %3702 = vst [vmem:[%s278_s19 + $0x10] sm:$0xff] %v3694_v45  ;;  %v3695_v44 = vmax.f32 %v4925_v48, 0.0 }
 0x3e9   : > { %3700 = vst [vmem:[%s278_s19] sm:$0xff] %v3692_v37  ;;  %v3693_v52 = vmax.f32 %v4928_v42, 0.0 }
 0x3ea   : > { %3703 = vst [vmem:[%s278_s19 + $0x18] sm:$0xff] %v3695_v44 }
 0x3eb   : > { %3701 = vst [vmem:[%s278_s19 + $0x8] sm:$0xff] %v3693_v52 }
 0x3ff   : > { %v4899_v60 = vpop.f32.mrb[4].mxu1 }
 0x400   : > { %v4930_v3 = vadd.f32 %v4931_v55, %v4899_v60  ;;  %v3669_v5 = vpop.f32.mrb[5].mxu1 }
 0x401   : > { %v4932_v10 = vadd.f32 %v4931_v55, %v3669_v5  ;;  %v4900_v12 = vpop.f32.mrb[6].mxu1 }
 0x402   : > { %v3698_v0 = vmax.f32 %v4930_v3, 0.0  ;;  %v4934_v1 = vadd.f32 %v4931_v55, %v4900_v12  ;;  %v3672_v6 = vpop.f32.mrb[7].mxu1 }
 0x403   : > { %v3696_v13 = vmax.f32 %v4932_v10, 0.0  ;;  %v4936_v7 = vadd.f32 %v4931_v55, %v3672_v6 }
 0x404   : > { %3706 = vst [vmem:[%s278_s19 + $0x30] sm:$0xff] %v3698_v0  ;;  %v3699_v20 = vmax.f32 %v4934_v1, 0.0 }
 0x405   : > { %3704 = vst [vmem:[%s278_s19 + $0x20] sm:$0xff] %v3696_v13  ;;  %v3697_v23 = vmax.f32 %v4936_v7, 0.0 }
 0x406   : > { %3707 = vst [vmem:[%s278_s19 + $0x38] sm:$0xff] %v3699_v20 }
 0x407   : > { %3705 = vst [vmem:[%s278_s19 + $0x28] sm:$0xff] %v3697_v23 }
 0x408 PF: > { %s17_s24 = sadd.s32 1, %s5250_s24  }
 0x409   : > { %p14_p4 = scmp.ge.s32.totalorder %s17_s24, 4  }
 0x40b   :  { %16 = sbr.rel (!%p14_p4) target bundleno = 1 (0x1), region = 97 }

</bundles_post_ra>
